<compile_context>
chip_gen: v5e
topology: v5e:2x2
jax: 0.10.0
libtpu: 0.0.40
codegen_flags: <defaults>
</compile_context>

<pallas_src>
import math

import jax
import jax.numpy as jnp
from jax.experimental import pallas as pl
from jax.experimental.pallas import tpu as pltpu

# ---- config (matches the PyTorch module: vocab_size=10, max_len=12; small dims) ----
VOCAB_SIZE = 10
VOCAB_PAD = 128            # lane-dense LM-head width (sliced back to VOCAB_SIZE)
MAX_LEN = 12
EMBED_DIM = 32
NUM_HEADS = 4
NUM_BLOCKS = 2
HEAD_DIM = EMBED_DIM // NUM_HEADS
FF_DIM = 4 * EMBED_DIM
LN_EPS = 1e-5


# ---------------------------------------------------------------------------
# helpers shared by kernel and reference
# ---------------------------------------------------------------------------
def _layer_norm(h, w, b):
    mu = jnp.mean(h, axis=-1, keepdims=True)
    var = jnp.mean((h - mu) ** 2, axis=-1, keepdims=True)
    return (h - mu) * jax.lax.rsqrt(var + LN_EPS) * w + b


def _gelu(h):
    # exact (erf) GELU, as used by torch.nn.GELU()
    return 0.5 * h * (1.0 + jax.lax.erf(h * (1.0 / math.sqrt(2.0))))


# ---------------------------------------------------------------------------
# Pallas kernel: whole transformer stack (embedded input -> padded logits)
# ---------------------------------------------------------------------------
def gpt_kernel(x_ref, pos_ref,
               ln1w_ref, ln1b_ref, wqkv_ref, bqkv_ref, wo_ref, bo_ref,
               ln2w_ref, ln2b_ref, w1_ref, b1_ref, w2_ref, b2_ref,
               lnfw_ref, lnfb_ref, wfc_ref, bfc_ref,
               out_ref):
    B, S, D = x_ref.shape
    H, hd = NUM_HEADS, HEAD_DIM

    # token embedding + positional embedding (dropout == identity at inference)
    x = x_ref[...] + pos_ref[...]                      # (B,S,D) + (S,D) broadcast

    # additive causal mask, computed once (0 on/below diagonal, -1e30 above)
    row = jax.lax.broadcasted_iota(jnp.int32, (S, S), 0)
    col = jax.lax.broadcasted_iota(jnp.int32, (S, S), 1)
    addmask = jnp.where(row >= col, 0.0, -1e30).astype(jnp.float32)

    for l in range(NUM_BLOCKS):
        # ---------------- attention sub-layer (pre-LN) ----------------
        h = _layer_norm(x, ln1w_ref[l], ln1b_ref[l]).reshape(B * S, D)

        # fused QKV projection: one full-width matmul (scale folded into Wq/bq host-side)
        qkv = jnp.dot(h, wqkv_ref[l], preferred_element_type=jnp.float32) + bqkv_ref[l]

        def split_heads(part):
            # qkv columns: [q(D) | k(D) | v(D)], each D laid out head-major (H, hd).
            # Stack heads along a new leading batch axis -> (H*B, S, hd).
            base = part * D
            return jnp.concatenate(
                [qkv[:, base + i * hd: base + (i + 1) * hd].reshape(B, S, hd)
                 for i in range(H)],
                axis=0)

        q = split_heads(0)                             # (H*B, S, hd)
        k = split_heads(1)
        v = split_heads(2)

        # all heads in one batched score / softmax / PV chain
        s = jnp.einsum('nqd,nkd->nqk', q, k,
                       preferred_element_type=jnp.float32)        # (H*B, S, S)
        s = s + addmask
        m = jnp.max(s, axis=-1, keepdims=True)
        p = jnp.exp(s - m)
        p = p * pl.reciprocal(jnp.sum(p, axis=-1, keepdims=True), approx=True)
        o = jnp.einsum('nqk,nkd->nqd', p, v,
                       preferred_element_type=jnp.float32)        # (H*B, S, hd)

        # concat heads back onto the lane axis, then ONE output projection
        o_cat = jnp.concatenate(
            [o[i * B:(i + 1) * B].reshape(B * S, hd) for i in range(H)],
            axis=-1)                                               # (B*S, D)
        attn = jnp.dot(o_cat, wo_ref[l],
                       preferred_element_type=jnp.float32) + bo_ref[l]
        x = x + attn.reshape(B, S, D)

        # ---------------- MLP sub-layer (pre-LN) ----------------
        h = _layer_norm(x, ln2w_ref[l], ln2b_ref[l]).reshape(B * S, D)
        z = jnp.dot(h, w1_ref[l], preferred_element_type=jnp.float32) + b1_ref[l]
        z = _gelu(z)
        z = jnp.dot(z, w2_ref[l], preferred_element_type=jnp.float32) + b2_ref[l]
        x = x + z.reshape(B, S, D)

    # ---------------- final LayerNorm + LM head (lane-padded to 128) ----------------
    h = _layer_norm(x, lnfw_ref[...], lnfb_ref[...]).reshape(B * S, D)
    logits = jnp.dot(h, wfc_ref[...], preferred_element_type=jnp.float32) + bfc_ref[...]
    out_ref[...] = logits.reshape(B, S, VOCAB_PAD)


# ---------------------------------------------------------------------------
# Host-side wrapper
# ---------------------------------------------------------------------------
def _kernel_args(tokens, p):
    B, S = tokens.shape
    tok_emb = jnp.take(p['tok_embed'], tokens, axis=0)      # embedding gather (glue)
    pos = p['pos_embed'][0, :S, :]

    # fold attention scale into the Q projection; fuse QKV into one (D, 3D) weight
    scale = 1.0 / math.sqrt(HEAD_DIM)
    wqkv = jnp.concatenate([p['wq'] * scale, p['wk'], p['wv']], axis=-1)   # (L, D, 3D)
    bqkv = jnp.concatenate([p['bq'] * scale, p['bk'], p['bv']], axis=-1)   # (L, 3D)

    # lane-dense LM head: pad vocab dim 10 -> 128 with zeros
    wfc_pad = jnp.zeros((EMBED_DIM, VOCAB_PAD), jnp.float32).at[:, :VOCAB_SIZE].set(p['wfc'])
    bfc_pad = jnp.zeros((1, VOCAB_PAD), jnp.float32).at[:, :VOCAB_SIZE].set(p['bfc'])

    return (tok_emb, pos,
            p['ln1w'], p['ln1b'], wqkv, bqkv, p['wo'], p['bo'],
            p['ln2w'], p['ln2b'], p['w1'], p['b1'], p['w2'], p['b2'],
            p['lnfw'].reshape(1, -1), p['lnfb'].reshape(1, -1),
            wfc_pad, bfc_pad)


@jax.jit
def gpt_forward(tokens, params):
    B, S = tokens.shape
    args = _kernel_args(tokens, params)
    vmem = pl.BlockSpec(memory_space=pltpu.MemorySpace.VMEM)
    logits_pad = pl.pallas_call(
        gpt_kernel,
        out_shape=jax.ShapeDtypeStruct((B, S, VOCAB_PAD), jnp.float32),
        in_specs=[vmem] * len(args),
        out_specs=vmem,
    )(*args)
    return logits_pad[:, :, :VOCAB_SIZE]


# ---------------------------------------------------------------------------
# Pure-JAX reference (for correctness check)
# ---------------------------------------------------------------------------
def ref_forward(tokens, p):
    B, S = tokens.shape
    with jax.default_matmul_precision('float32'):
        x = jnp.take(p['tok_embed'], tokens, axis=0) + p['pos_embed'][:, :S, :]
        causal = jnp.tril(jnp.ones((S, S), bool))
        for l in range(NUM_BLOCKS):
            h = _layer_norm(x, p['ln1w'][l], p['ln1b'][l])
            q = (h @ p['wq'][l] + p['bq'][l]).reshape(B, S, NUM_HEADS, HEAD_DIM).transpose(0, 2, 1, 3)
            k = (h @ p['wk'][l] + p['bk'][l]).reshape(B, S, NUM_HEADS, HEAD_DIM).transpose(0, 2, 1, 3)
            v = (h @ p['wv'][l] + p['bv'][l]).reshape(B, S, NUM_HEADS, HEAD_DIM).transpose(0, 2, 1, 3)
            s = (q @ jnp.swapaxes(k, -1, -2)) / math.sqrt(HEAD_DIM)
            s = jnp.where(causal, s, -1e30)
            a = jax.nn.softmax(s, axis=-1)
            o = (a @ v).transpose(0, 2, 1, 3).reshape(B, S, EMBED_DIM)
            x = x + o @ p['wo'][l] + p['bo'][l]
            h = _layer_norm(x, p['ln2w'][l], p['ln2b'][l])
            z = _gelu(h @ p['w1'][l] + p['b1'][l])
            x = x + z @ p['w2'][l] + p['b2'][l]
        h = _layer_norm(x, p['lnfw'], p['lnfb'])
        return h @ p['wfc'] + p['bfc']


# ---------------------------------------------------------------------------
# Deterministic parameter init
# ---------------------------------------------------------------------------
def init_params(key):
    ks = iter(jax.random.split(key, 16))

    def nrm(shape, std=0.02):
        return (std * jax.random.normal(next(ks), shape)).astype(jnp.float32)

    L, D, F, V = NUM_BLOCKS, EMBED_DIM, FF_DIM, VOCAB_SIZE
    return dict(
        tok_embed=nrm((V, D)),
        # torch init is zeros; random here so the test is non-trivial
        pos_embed=nrm((1, MAX_LEN, D)),
        ln1w=jnp.ones((L, D), jnp.float32), ln1b=jnp.zeros((L, D), jnp.float32),
        wq=nrm((L, D, D)), bq=nrm((L, D), 0.01),
        wk=nrm((L, D, D)), bk=nrm((L, D), 0.01),
        wv=nrm((L, D, D)), bv=nrm((L, D), 0.01),
        wo=nrm((L, D, D)), bo=nrm((L, D), 0.01),
        ln2w=jnp.ones((L, D), jnp.float32), ln2b=jnp.zeros((L, D), jnp.float32),
        w1=nrm((L, D, F)), b1=nrm((L, F), 0.01),
        w2=nrm((L, F, D)), b2=nrm((L, D), 0.01),
        lnfw=jnp.ones((D,), jnp.float32), lnfb=jnp.zeros((D,), jnp.float32),
        wfc=nrm((D, V)), bfc=nrm((V,), 0.01),
    )


if __name__ == "__main__":
    key = jax.random.PRNGKey(0)
    pkey, tkey = jax.random.split(key)
    params = init_params(pkey)

    B, S = 2, 8                         # seq_len <= max_len (12)
    tokens = jax.random.randint(tkey, (B, S), 0, VOCAB_SIZE, dtype=jnp.int32)

    logits = gpt_forward(tokens, params)
    logits = jax.block_until_ready(logits)

    ref = ref_forward(tokens, params)
    assert logits.shape == (B, S, VOCAB_SIZE)
    assert jnp.allclose(logits, ref, atol=5e-3, rtol=5e-3), (
        f"max abs diff {jnp.max(jnp.abs(logits - ref))}")

    print("KERNEL_OK")
</pallas_src>

<mosaic_0001>
module attributes {stable_mosaic.version = 11 : i64} {
  func.func @gpt_kernel(%arg0: memref<2x8x32xf32, #tpu.memory_space<vmem>>, %arg1: memref<8x32xf32, #tpu.memory_space<vmem>>, %arg2: memref<2x32xf32, #tpu.memory_space<vmem>>, %arg3: memref<2x32xf32, #tpu.memory_space<vmem>>, %arg4: memref<2x32x96xf32, #tpu.memory_space<vmem>>, %arg5: memref<2x96xf32, #tpu.memory_space<vmem>>, %arg6: memref<2x32x32xf32, #tpu.memory_space<vmem>>, %arg7: memref<2x32xf32, #tpu.memory_space<vmem>>, %arg8: memref<2x32xf32, #tpu.memory_space<vmem>>, %arg9: memref<2x32xf32, #tpu.memory_space<vmem>>, %arg10: memref<2x32x128xf32, #tpu.memory_space<vmem>>, %arg11: memref<2x128xf32, #tpu.memory_space<vmem>>, %arg12: memref<2x128x32xf32, #tpu.memory_space<vmem>>, %arg13: memref<2x32xf32, #tpu.memory_space<vmem>>, %arg14: memref<1x32xf32, #tpu.memory_space<vmem>>, %arg15: memref<1x32xf32, #tpu.memory_space<vmem>>, %arg16: memref<32x128xf32, #tpu.memory_space<vmem>>, %arg17: memref<1x128xf32, #tpu.memory_space<vmem>>, %arg18: memref<2x8x128xf32, #tpu.memory_space<vmem>>) attributes {dimension_semantics = [], scalar_prefetch = 0 : i64, scratch_operands = 0 : i64, tpu.core_type = #tpu.core_type<tc>} {
    %c0 = arith.constant 0 : index
    %c0_0 = arith.constant 0 : index
    %c0_1 = arith.constant 0 : index
    %0 = vector.load %arg0[%c0, %c0_0, %c0_1] : memref<2x8x32xf32, #tpu.memory_space<vmem>>, vector<2x8x32xf32>
    %c0_2 = arith.constant 0 : index
    %c0_3 = arith.constant 0 : index
    %1 = vector.load %arg1[%c0_2, %c0_3] : memref<8x32xf32, #tpu.memory_space<vmem>>, vector<8x32xf32>
    %2 = vector.shape_cast %1 : vector<8x32xf32> to vector<1x8x32xf32>
    %3 = vector.broadcast %2 : vector<1x8x32xf32> to vector<2x8x32xf32>
    %4 = arith.addf %0, %3 : vector<2x8x32xf32>
    %5 = tpu.iota {dimensions = array<i32: 0>} : vector<8x8xi32>
    %6 = tpu.iota {dimensions = array<i32: 1>} : vector<8x8xi32>
    %7 = arith.cmpi sge, %5, %6 : vector<8x8xi32>
    %cst = arith.constant 0.000000e+00 : f32
    %cst_4 = arith.constant -1.000000e+30 : f32
    %8 = vector.broadcast %cst : f32 to vector<8x8xf32>
    %9 = vector.broadcast %cst_4 : f32 to vector<8x8xf32>
    %10 = arith.select %7, %8, %9 : vector<8x8xi1>, vector<8x8xf32>
    %c0_5 = arith.constant 0 : index
    %c0_6 = arith.constant 0 : index
    %11 = vector.load %arg2[%c0_5, %c0_6] : memref<2x32xf32, #tpu.memory_space<vmem>>, vector<1x32xf32>
    %12 = vector.shape_cast %11 : vector<1x32xf32> to vector<32xf32>
    %c0_7 = arith.constant 0 : index
    %c0_8 = arith.constant 0 : index
    %13 = vector.load %arg3[%c0_7, %c0_8] : memref<2x32xf32, #tpu.memory_space<vmem>>, vector<1x32xf32>
    %14 = vector.shape_cast %13 : vector<1x32xf32> to vector<32xf32>
    %cst_9 = arith.constant dense<0.000000e+00> : vector<2x8xf32>
    %15 = vector.multi_reduction <add>, %4, %cst_9 [2] : vector<2x8x32xf32> to vector<2x8xf32>
    %16 = vector.shape_cast %15 : vector<2x8xf32> to vector<2x8x1xf32>
    %cst_10 = arith.constant 3.200000e+01 : f32
    %17 = vector.broadcast %cst_10 : f32 to vector<2x8x1xf32>
    %18 = arith.divf %16, %17 : vector<2x8x1xf32>
    %19 = vector.broadcast %18 : vector<2x8x1xf32> to vector<2x8x32xf32>
    %20 = arith.subf %4, %19 : vector<2x8x32xf32>
    %21 = arith.mulf %20, %20 : vector<2x8x32xf32>
    %cst_11 = arith.constant dense<0.000000e+00> : vector<2x8xf32>
    %22 = vector.multi_reduction <add>, %21, %cst_11 [2] : vector<2x8x32xf32> to vector<2x8xf32>
    %23 = vector.shape_cast %22 : vector<2x8xf32> to vector<2x8x1xf32>
    %cst_12 = arith.constant 3.200000e+01 : f32
    %24 = vector.broadcast %cst_12 : f32 to vector<2x8x1xf32>
    %25 = arith.divf %23, %24 : vector<2x8x1xf32>
    %26 = vector.broadcast %18 : vector<2x8x1xf32> to vector<2x8x32xf32>
    %27 = arith.subf %4, %26 : vector<2x8x32xf32>
    %cst_13 = arith.constant 9.99999974E-6 : f32
    %28 = vector.broadcast %cst_13 : f32 to vector<2x8x1xf32>
    %29 = arith.addf %25, %28 : vector<2x8x1xf32>
    %30 = math.rsqrt %29 : vector<2x8x1xf32>
    %31 = vector.broadcast %30 : vector<2x8x1xf32> to vector<2x8x32xf32>
    %32 = arith.mulf %27, %31 : vector<2x8x32xf32>
    %33 = vector.shape_cast %12 : vector<32xf32> to vector<1x1x32xf32>
    %34 = vector.broadcast %33 : vector<1x1x32xf32> to vector<2x8x32xf32>
    %35 = arith.mulf %32, %34 : vector<2x8x32xf32>
    %36 = vector.shape_cast %14 : vector<32xf32> to vector<1x1x32xf32>
    %37 = vector.broadcast %36 : vector<1x1x32xf32> to vector<2x8x32xf32>
    %38 = arith.addf %35, %37 : vector<2x8x32xf32>
    %39 = vector.shape_cast %38 : vector<2x8x32xf32> to vector<16x32xf32>
    %c0_14 = arith.constant 0 : index
    %c0_15 = arith.constant 0 : index
    %c0_16 = arith.constant 0 : index
    %40 = vector.load %arg4[%c0_14, %c0_15, %c0_16] : memref<2x32x96xf32, #tpu.memory_space<vmem>>, vector<1x32x96xf32>
    %41 = vector.shape_cast %40 : vector<1x32x96xf32> to vector<32x96xf32>
    %cst_17 = arith.constant dense<0.000000e+00> : vector<16x96xf32>
    %42 = tpu.matmul %39, %41, %cst_17 {dimension_numbers = #tpu.dot_dimension_numbers<[1], [0], [0], [1], [0, 0, 1, 1], [], []>} : vector<16x32xf32>, vector<32x96xf32>, vector<16x96xf32> -> vector<16x96xf32>
    %c0_18 = arith.constant 0 : index
    %c0_19 = arith.constant 0 : index
    %43 = vector.load %arg5[%c0_18, %c0_19] : memref<2x96xf32, #tpu.memory_space<vmem>>, vector<1x96xf32>
    %44 = vector.shape_cast %43 : vector<1x96xf32> to vector<96xf32>
    %45 = vector.shape_cast %44 : vector<96xf32> to vector<1x96xf32>
    %46 = vector.broadcast %45 : vector<1x96xf32> to vector<16x96xf32>
    %47 = arith.addf %42, %46 : vector<16x96xf32>
    %48 = vector.extract_strided_slice %47 {offsets = [0, 0], sizes = [16, 8], strides = [1, 1]} : vector<16x96xf32> to vector<16x8xf32>
    %49 = vector.shape_cast %48 : vector<16x8xf32> to vector<2x8x8xf32>
    %50 = vector.extract_strided_slice %47 {offsets = [0, 8], sizes = [16, 8], strides = [1, 1]} : vector<16x96xf32> to vector<16x8xf32>
    %51 = vector.shape_cast %50 : vector<16x8xf32> to vector<2x8x8xf32>
    %52 = vector.extract_strided_slice %47 {offsets = [0, 16], sizes = [16, 8], strides = [1, 1]} : vector<16x96xf32> to vector<16x8xf32>
    %53 = vector.shape_cast %52 : vector<16x8xf32> to vector<2x8x8xf32>
    %54 = vector.extract_strided_slice %47 {offsets = [0, 24], sizes = [16, 8], strides = [1, 1]} : vector<16x96xf32> to vector<16x8xf32>
    %55 = vector.shape_cast %54 : vector<16x8xf32> to vector<2x8x8xf32>
    %56 = tpu.concatenate %49, %51, %53, %55 in 0 : vector<2x8x8xf32>, vector<2x8x8xf32>, vector<2x8x8xf32>, vector<2x8x8xf32> -> vector<8x8x8xf32>
    %57 = vector.extract_strided_slice %47 {offsets = [0, 32], sizes = [16, 8], strides = [1, 1]} : vector<16x96xf32> to vector<16x8xf32>
    %58 = vector.shape_cast %57 : vector<16x8xf32> to vector<2x8x8xf32>
    %59 = vector.extract_strided_slice %47 {offsets = [0, 40], sizes = [16, 8], strides = [1, 1]} : vector<16x96xf32> to vector<16x8xf32>
    %60 = vector.shape_cast %59 : vector<16x8xf32> to vector<2x8x8xf32>
    %61 = vector.extract_strided_slice %47 {offsets = [0, 48], sizes = [16, 8], strides = [1, 1]} : vector<16x96xf32> to vector<16x8xf32>
    %62 = vector.shape_cast %61 : vector<16x8xf32> to vector<2x8x8xf32>
    %63 = vector.extract_strided_slice %47 {offsets = [0, 56], sizes = [16, 8], strides = [1, 1]} : vector<16x96xf32> to vector<16x8xf32>
    %64 = vector.shape_cast %63 : vector<16x8xf32> to vector<2x8x8xf32>
    %65 = tpu.concatenate %58, %60, %62, %64 in 0 : vector<2x8x8xf32>, vector<2x8x8xf32>, vector<2x8x8xf32>, vector<2x8x8xf32> -> vector<8x8x8xf32>
    %66 = vector.extract_strided_slice %47 {offsets = [0, 64], sizes = [16, 8], strides = [1, 1]} : vector<16x96xf32> to vector<16x8xf32>
    %67 = vector.shape_cast %66 : vector<16x8xf32> to vector<2x8x8xf32>
    %68 = vector.extract_strided_slice %47 {offsets = [0, 72], sizes = [16, 8], strides = [1, 1]} : vector<16x96xf32> to vector<16x8xf32>
    %69 = vector.shape_cast %68 : vector<16x8xf32> to vector<2x8x8xf32>
    %70 = vector.extract_strided_slice %47 {offsets = [0, 80], sizes = [16, 8], strides = [1, 1]} : vector<16x96xf32> to vector<16x8xf32>
    %71 = vector.shape_cast %70 : vector<16x8xf32> to vector<2x8x8xf32>
    %72 = vector.extract_strided_slice %47 {offsets = [0, 88], sizes = [16, 8], strides = [1, 1]} : vector<16x96xf32> to vector<16x8xf32>
    %73 = vector.shape_cast %72 : vector<16x8xf32> to vector<2x8x8xf32>
    %74 = tpu.concatenate %67, %69, %71, %73 in 0 : vector<2x8x8xf32>, vector<2x8x8xf32>, vector<2x8x8xf32>, vector<2x8x8xf32> -> vector<8x8x8xf32>
    "tpu.trace_start"() <{level = 10 : i32, message = "nqd,nkd->nqk"}> : () -> ()
    %cst_20 = arith.constant dense<0.000000e+00> : vector<8x8x8xf32>
    %75 = tpu.matmul %56, %65, %cst_20 {dimension_numbers = #tpu.dot_dimension_numbers<[2], [2], [1], [1], [0, 0, 0, 1, 1, 1], [0], [0]>} : vector<8x8x8xf32>, vector<8x8x8xf32>, vector<8x8x8xf32> -> vector<8x8x8xf32>
    "tpu.trace_stop"() : () -> ()
    %76 = vector.shape_cast %10 : vector<8x8xf32> to vector<1x8x8xf32>
    %77 = vector.broadcast %76 : vector<1x8x8xf32> to vector<8x8x8xf32>
    %78 = arith.addf %75, %77 : vector<8x8x8xf32>
    %cst_21 = arith.constant dense<0xFF800000> : vector<8x8xf32>
    %79 = vector.multi_reduction <maximumf>, %78, %cst_21 [2] : vector<8x8x8xf32> to vector<8x8xf32>
    %80 = vector.shape_cast %79 : vector<8x8xf32> to vector<8x8x1xf32>
    %81 = vector.broadcast %80 : vector<8x8x1xf32> to vector<8x8x8xf32>
    %82 = arith.subf %78, %81 : vector<8x8x8xf32>
    %83 = math.exp %82 : vector<8x8x8xf32>
    %cst_22 = arith.constant dense<0.000000e+00> : vector<8x8xf32>
    %84 = vector.multi_reduction <add>, %83, %cst_22 [2] : vector<8x8x8xf32> to vector<8x8xf32>
    %85 = vector.shape_cast %84 : vector<8x8xf32> to vector<8x8x1xf32>
    %86 = tpu.reciprocal %85 {approx = true} : vector<8x8x1xf32> -> vector<8x8x1xf32>
    %87 = vector.broadcast %86 : vector<8x8x1xf32> to vector<8x8x8xf32>
    %88 = arith.mulf %83, %87 : vector<8x8x8xf32>
    "tpu.trace_start"() <{level = 10 : i32, message = "nqk,nkd->nqd"}> : () -> ()
    %cst_23 = arith.constant dense<0.000000e+00> : vector<8x8x8xf32>
    %89 = tpu.matmul %88, %74, %cst_23 {dimension_numbers = #tpu.dot_dimension_numbers<[2], [1], [1], [2], [0, 0, 0, 1, 1, 2], [0], [0]>} : vector<8x8x8xf32>, vector<8x8x8xf32>, vector<8x8x8xf32> -> vector<8x8x8xf32>
    "tpu.trace_stop"() : () -> ()
    %90 = vector.extract_strided_slice %89 {offsets = [0, 0, 0], sizes = [2, 8, 8], strides = [1, 1, 1]} : vector<8x8x8xf32> to vector<2x8x8xf32>
    %91 = vector.shape_cast %90 : vector<2x8x8xf32> to vector<16x8xf32>
    %92 = vector.extract_strided_slice %89 {offsets = [2, 0, 0], sizes = [2, 8, 8], strides = [1, 1, 1]} : vector<8x8x8xf32> to vector<2x8x8xf32>
    %93 = vector.shape_cast %92 : vector<2x8x8xf32> to vector<16x8xf32>
    %94 = vector.extract_strided_slice %89 {offsets = [4, 0, 0], sizes = [2, 8, 8], strides = [1, 1, 1]} : vector<8x8x8xf32> to vector<2x8x8xf32>
    %95 = vector.shape_cast %94 : vector<2x8x8xf32> to vector<16x8xf32>
    %96 = vector.extract_strided_slice %89 {offsets = [6, 0, 0], sizes = [2, 8, 8], strides = [1, 1, 1]} : vector<8x8x8xf32> to vector<2x8x8xf32>
    %97 = vector.shape_cast %96 : vector<2x8x8xf32> to vector<16x8xf32>
    %98 = tpu.concatenate %91, %93, %95, %97 in 1 : vector<16x8xf32>, vector<16x8xf32>, vector<16x8xf32>, vector<16x8xf32> -> vector<16x32xf32>
    %c0_24 = arith.constant 0 : index
    %c0_25 = arith.constant 0 : index
    %c0_26 = arith.constant 0 : index
    %99 = vector.load %arg6[%c0_24, %c0_25, %c0_26] : memref<2x32x32xf32, #tpu.memory_space<vmem>>, vector<1x32x32xf32>
    %100 = vector.shape_cast %99 : vector<1x32x32xf32> to vector<32x32xf32>
    %cst_27 = arith.constant dense<0.000000e+00> : vector<16x32xf32>
    %101 = tpu.matmul %98, %100, %cst_27 {dimension_numbers = #tpu.dot_dimension_numbers<[1], [0], [0], [1], [0, 0, 1, 1], [], []>} : vector<16x32xf32>, vector<32x32xf32>, vector<16x32xf32> -> vector<16x32xf32>
    %c0_28 = arith.constant 0 : index
    %c0_29 = arith.constant 0 : index
    %102 = vector.load %arg7[%c0_28, %c0_29] : memref<2x32xf32, #tpu.memory_space<vmem>>, vector<1x32xf32>
    %103 = vector.shape_cast %102 : vector<1x32xf32> to vector<32xf32>
    %104 = vector.shape_cast %103 : vector<32xf32> to vector<1x32xf32>
    %105 = vector.broadcast %104 : vector<1x32xf32> to vector<16x32xf32>
    %106 = arith.addf %101, %105 : vector<16x32xf32>
    %107 = vector.shape_cast %106 : vector<16x32xf32> to vector<2x8x32xf32>
    %108 = arith.addf %4, %107 : vector<2x8x32xf32>
    %c0_30 = arith.constant 0 : index
    %c0_31 = arith.constant 0 : index
    %109 = vector.load %arg8[%c0_30, %c0_31] : memref<2x32xf32, #tpu.memory_space<vmem>>, vector<1x32xf32>
    %110 = vector.shape_cast %109 : vector<1x32xf32> to vector<32xf32>
    %c0_32 = arith.constant 0 : index
    %c0_33 = arith.constant 0 : index
    %111 = vector.load %arg9[%c0_32, %c0_33] : memref<2x32xf32, #tpu.memory_space<vmem>>, vector<1x32xf32>
    %112 = vector.shape_cast %111 : vector<1x32xf32> to vector<32xf32>
    %cst_34 = arith.constant dense<0.000000e+00> : vector<2x8xf32>
    %113 = vector.multi_reduction <add>, %108, %cst_34 [2] : vector<2x8x32xf32> to vector<2x8xf32>
    %114 = vector.shape_cast %113 : vector<2x8xf32> to vector<2x8x1xf32>
    %cst_35 = arith.constant 3.200000e+01 : f32
    %115 = vector.broadcast %cst_35 : f32 to vector<2x8x1xf32>
    %116 = arith.divf %114, %115 : vector<2x8x1xf32>
    %117 = vector.broadcast %116 : vector<2x8x1xf32> to vector<2x8x32xf32>
    %118 = arith.subf %108, %117 : vector<2x8x32xf32>
    %119 = arith.mulf %118, %118 : vector<2x8x32xf32>
    %cst_36 = arith.constant dense<0.000000e+00> : vector<2x8xf32>
    %120 = vector.multi_reduction <add>, %119, %cst_36 [2] : vector<2x8x32xf32> to vector<2x8xf32>
    %121 = vector.shape_cast %120 : vector<2x8xf32> to vector<2x8x1xf32>
    %cst_37 = arith.constant 3.200000e+01 : f32
    %122 = vector.broadcast %cst_37 : f32 to vector<2x8x1xf32>
    %123 = arith.divf %121, %122 : vector<2x8x1xf32>
    %124 = vector.broadcast %116 : vector<2x8x1xf32> to vector<2x8x32xf32>
    %125 = arith.subf %108, %124 : vector<2x8x32xf32>
    %cst_38 = arith.constant 9.99999974E-6 : f32
    %126 = vector.broadcast %cst_38 : f32 to vector<2x8x1xf32>
    %127 = arith.addf %123, %126 : vector<2x8x1xf32>
    %128 = math.rsqrt %127 : vector<2x8x1xf32>
    %129 = vector.broadcast %128 : vector<2x8x1xf32> to vector<2x8x32xf32>
    %130 = arith.mulf %125, %129 : vector<2x8x32xf32>
    %131 = vector.shape_cast %110 : vector<32xf32> to vector<1x1x32xf32>
    %132 = vector.broadcast %131 : vector<1x1x32xf32> to vector<2x8x32xf32>
    %133 = arith.mulf %130, %132 : vector<2x8x32xf32>
    %134 = vector.shape_cast %112 : vector<32xf32> to vector<1x1x32xf32>
    %135 = vector.broadcast %134 : vector<1x1x32xf32> to vector<2x8x32xf32>
    %136 = arith.addf %133, %135 : vector<2x8x32xf32>
    %137 = vector.shape_cast %136 : vector<2x8x32xf32> to vector<16x32xf32>
    %c0_39 = arith.constant 0 : index
    %c0_40 = arith.constant 0 : index
    %c0_41 = arith.constant 0 : index
    %138 = vector.load %arg10[%c0_39, %c0_40, %c0_41] : memref<2x32x128xf32, #tpu.memory_space<vmem>>, vector<1x32x128xf32>
    %139 = vector.shape_cast %138 : vector<1x32x128xf32> to vector<32x128xf32>
    %cst_42 = arith.constant dense<0.000000e+00> : vector<16x128xf32>
    %140 = tpu.matmul %137, %139, %cst_42 {dimension_numbers = #tpu.dot_dimension_numbers<[1], [0], [0], [1], [0, 0, 1, 1], [], []>} : vector<16x32xf32>, vector<32x128xf32>, vector<16x128xf32> -> vector<16x128xf32>
    %c0_43 = arith.constant 0 : index
    %c0_44 = arith.constant 0 : index
    %141 = vector.load %arg11[%c0_43, %c0_44] : memref<2x128xf32, #tpu.memory_space<vmem>>, vector<1x128xf32>
    %142 = vector.shape_cast %141 : vector<1x128xf32> to vector<128xf32>
    %143 = vector.shape_cast %142 : vector<128xf32> to vector<1x128xf32>
    %144 = vector.broadcast %143 : vector<1x128xf32> to vector<16x128xf32>
    %145 = arith.addf %140, %144 : vector<16x128xf32>
    %cst_45 = arith.constant 5.000000e-01 : f32
    %146 = vector.broadcast %cst_45 : f32 to vector<16x128xf32>
    %147 = arith.mulf %146, %145 : vector<16x128xf32>
    %cst_46 = arith.constant 0.707106769 : f32
    %148 = vector.broadcast %cst_46 : f32 to vector<16x128xf32>
    %149 = arith.mulf %145, %148 : vector<16x128xf32>
    %150 = math.erf %149 : vector<16x128xf32>
    %cst_47 = arith.constant 1.000000e+00 : f32
    %151 = vector.broadcast %cst_47 : f32 to vector<16x128xf32>
    %152 = arith.addf %151, %150 : vector<16x128xf32>
    %153 = arith.mulf %147, %152 : vector<16x128xf32>
    %c0_48 = arith.constant 0 : index
    %c0_49 = arith.constant 0 : index
    %c0_50 = arith.constant 0 : index
    %154 = vector.load %arg12[%c0_48, %c0_49, %c0_50] : memref<2x128x32xf32, #tpu.memory_space<vmem>>, vector<1x128x32xf32>
    %155 = vector.shape_cast %154 : vector<1x128x32xf32> to vector<128x32xf32>
    %cst_51 = arith.constant dense<0.000000e+00> : vector<16x32xf32>
    %156 = tpu.matmul %153, %155, %cst_51 {dimension_numbers = #tpu.dot_dimension_numbers<[1], [0], [0], [1], [0, 0, 1, 1], [], []>} : vector<16x128xf32>, vector<128x32xf32>, vector<16x32xf32> -> vector<16x32xf32>
    %c0_52 = arith.constant 0 : index
    %c0_53 = arith.constant 0 : index
    %157 = vector.load %arg13[%c0_52, %c0_53] : memref<2x32xf32, #tpu.memory_space<vmem>>, vector<1x32xf32>
    %158 = vector.shape_cast %157 : vector<1x32xf32> to vector<32xf32>
    %159 = vector.shape_cast %158 : vector<32xf32> to vector<1x32xf32>
    %160 = vector.broadcast %159 : vector<1x32xf32> to vector<16x32xf32>
    %161 = arith.addf %156, %160 : vector<16x32xf32>
    %162 = vector.shape_cast %161 : vector<16x32xf32> to vector<2x8x32xf32>
    %163 = arith.addf %108, %162 : vector<2x8x32xf32>
    %c1 = arith.constant 1 : index
    %c0_54 = arith.constant 0 : index
    %164 = vector.load %arg2[%c1, %c0_54] : memref<2x32xf32, #tpu.memory_space<vmem>>, vector<1x32xf32>
    %165 = vector.shape_cast %164 : vector<1x32xf32> to vector<32xf32>
    %c1_55 = arith.constant 1 : index
    %c0_56 = arith.constant 0 : index
    %166 = vector.load %arg3[%c1_55, %c0_56] : memref<2x32xf32, #tpu.memory_space<vmem>>, vector<1x32xf32>
    %167 = vector.shape_cast %166 : vector<1x32xf32> to vector<32xf32>
    %cst_57 = arith.constant dense<0.000000e+00> : vector<2x8xf32>
    %168 = vector.multi_reduction <add>, %163, %cst_57 [2] : vector<2x8x32xf32> to vector<2x8xf32>
    %169 = vector.shape_cast %168 : vector<2x8xf32> to vector<2x8x1xf32>
    %cst_58 = arith.constant 3.200000e+01 : f32
    %170 = vector.broadcast %cst_58 : f32 to vector<2x8x1xf32>
    %171 = arith.divf %169, %170 : vector<2x8x1xf32>
    %172 = vector.broadcast %171 : vector<2x8x1xf32> to vector<2x8x32xf32>
    %173 = arith.subf %163, %172 : vector<2x8x32xf32>
    %174 = arith.mulf %173, %173 : vector<2x8x32xf32>
    %cst_59 = arith.constant dense<0.000000e+00> : vector<2x8xf32>
    %175 = vector.multi_reduction <add>, %174, %cst_59 [2] : vector<2x8x32xf32> to vector<2x8xf32>
    %176 = vector.shape_cast %175 : vector<2x8xf32> to vector<2x8x1xf32>
    %cst_60 = arith.constant 3.200000e+01 : f32
    %177 = vector.broadcast %cst_60 : f32 to vector<2x8x1xf32>
    %178 = arith.divf %176, %177 : vector<2x8x1xf32>
    %179 = vector.broadcast %171 : vector<2x8x1xf32> to vector<2x8x32xf32>
    %180 = arith.subf %163, %179 : vector<2x8x32xf32>
    %cst_61 = arith.constant 9.99999974E-6 : f32
    %181 = vector.broadcast %cst_61 : f32 to vector<2x8x1xf32>
    %182 = arith.addf %178, %181 : vector<2x8x1xf32>
    %183 = math.rsqrt %182 : vector<2x8x1xf32>
    %184 = vector.broadcast %183 : vector<2x8x1xf32> to vector<2x8x32xf32>
    %185 = arith.mulf %180, %184 : vector<2x8x32xf32>
    %186 = vector.shape_cast %165 : vector<32xf32> to vector<1x1x32xf32>
    %187 = vector.broadcast %186 : vector<1x1x32xf32> to vector<2x8x32xf32>
    %188 = arith.mulf %185, %187 : vector<2x8x32xf32>
    %189 = vector.shape_cast %167 : vector<32xf32> to vector<1x1x32xf32>
    %190 = vector.broadcast %189 : vector<1x1x32xf32> to vector<2x8x32xf32>
    %191 = arith.addf %188, %190 : vector<2x8x32xf32>
    %192 = vector.shape_cast %191 : vector<2x8x32xf32> to vector<16x32xf32>
    %c1_62 = arith.constant 1 : index
    %c0_63 = arith.constant 0 : index
    %c0_64 = arith.constant 0 : index
    %193 = vector.load %arg4[%c1_62, %c0_63, %c0_64] : memref<2x32x96xf32, #tpu.memory_space<vmem>>, vector<1x32x96xf32>
    %194 = vector.shape_cast %193 : vector<1x32x96xf32> to vector<32x96xf32>
    %cst_65 = arith.constant dense<0.000000e+00> : vector<16x96xf32>
    %195 = tpu.matmul %192, %194, %cst_65 {dimension_numbers = #tpu.dot_dimension_numbers<[1], [0], [0], [1], [0, 0, 1, 1], [], []>} : vector<16x32xf32>, vector<32x96xf32>, vector<16x96xf32> -> vector<16x96xf32>
    %c1_66 = arith.constant 1 : index
    %c0_67 = arith.constant 0 : index
    %196 = vector.load %arg5[%c1_66, %c0_67] : memref<2x96xf32, #tpu.memory_space<vmem>>, vector<1x96xf32>
    %197 = vector.shape_cast %196 : vector<1x96xf32> to vector<96xf32>
    %198 = vector.shape_cast %197 : vector<96xf32> to vector<1x96xf32>
    %199 = vector.broadcast %198 : vector<1x96xf32> to vector<16x96xf32>
    %200 = arith.addf %195, %199 : vector<16x96xf32>
    %201 = vector.extract_strided_slice %200 {offsets = [0, 0], sizes = [16, 8], strides = [1, 1]} : vector<16x96xf32> to vector<16x8xf32>
    %202 = vector.shape_cast %201 : vector<16x8xf32> to vector<2x8x8xf32>
    %203 = vector.extract_strided_slice %200 {offsets = [0, 8], sizes = [16, 8], strides = [1, 1]} : vector<16x96xf32> to vector<16x8xf32>
    %204 = vector.shape_cast %203 : vector<16x8xf32> to vector<2x8x8xf32>
    %205 = vector.extract_strided_slice %200 {offsets = [0, 16], sizes = [16, 8], strides = [1, 1]} : vector<16x96xf32> to vector<16x8xf32>
    %206 = vector.shape_cast %205 : vector<16x8xf32> to vector<2x8x8xf32>
    %207 = vector.extract_strided_slice %200 {offsets = [0, 24], sizes = [16, 8], strides = [1, 1]} : vector<16x96xf32> to vector<16x8xf32>
    %208 = vector.shape_cast %207 : vector<16x8xf32> to vector<2x8x8xf32>
    %209 = tpu.concatenate %202, %204, %206, %208 in 0 : vector<2x8x8xf32>, vector<2x8x8xf32>, vector<2x8x8xf32>, vector<2x8x8xf32> -> vector<8x8x8xf32>
    %210 = vector.extract_strided_slice %200 {offsets = [0, 32], sizes = [16, 8], strides = [1, 1]} : vector<16x96xf32> to vector<16x8xf32>
    %211 = vector.shape_cast %210 : vector<16x8xf32> to vector<2x8x8xf32>
    %212 = vector.extract_strided_slice %200 {offsets = [0, 40], sizes = [16, 8], strides = [1, 1]} : vector<16x96xf32> to vector<16x8xf32>
    %213 = vector.shape_cast %212 : vector<16x8xf32> to vector<2x8x8xf32>
    %214 = vector.extract_strided_slice %200 {offsets = [0, 48], sizes = [16, 8], strides = [1, 1]} : vector<16x96xf32> to vector<16x8xf32>
    %215 = vector.shape_cast %214 : vector<16x8xf32> to vector<2x8x8xf32>
    %216 = vector.extract_strided_slice %200 {offsets = [0, 56], sizes = [16, 8], strides = [1, 1]} : vector<16x96xf32> to vector<16x8xf32>
    %217 = vector.shape_cast %216 : vector<16x8xf32> to vector<2x8x8xf32>
    %218 = tpu.concatenate %211, %213, %215, %217 in 0 : vector<2x8x8xf32>, vector<2x8x8xf32>, vector<2x8x8xf32>, vector<2x8x8xf32> -> vector<8x8x8xf32>
    %219 = vector.extract_strided_slice %200 {offsets = [0, 64], sizes = [16, 8], strides = [1, 1]} : vector<16x96xf32> to vector<16x8xf32>
    %220 = vector.shape_cast %219 : vector<16x8xf32> to vector<2x8x8xf32>
    %221 = vector.extract_strided_slice %200 {offsets = [0, 72], sizes = [16, 8], strides = [1, 1]} : vector<16x96xf32> to vector<16x8xf32>
    %222 = vector.shape_cast %221 : vector<16x8xf32> to vector<2x8x8xf32>
    %223 = vector.extract_strided_slice %200 {offsets = [0, 80], sizes = [16, 8], strides = [1, 1]} : vector<16x96xf32> to vector<16x8xf32>
    %224 = vector.shape_cast %223 : vector<16x8xf32> to vector<2x8x8xf32>
    %225 = vector.extract_strided_slice %200 {offsets = [0, 88], sizes = [16, 8], strides = [1, 1]} : vector<16x96xf32> to vector<16x8xf32>
    %226 = vector.shape_cast %225 : vector<16x8xf32> to vector<2x8x8xf32>
    %227 = tpu.concatenate %220, %222, %224, %226 in 0 : vector<2x8x8xf32>, vector<2x8x8xf32>, vector<2x8x8xf32>, vector<2x8x8xf32> -> vector<8x8x8xf32>
    "tpu.trace_start"() <{level = 10 : i32, message = "nqd,nkd->nqk"}> : () -> ()
    %cst_68 = arith.constant dense<0.000000e+00> : vector<8x8x8xf32>
    %228 = tpu.matmul %209, %218, %cst_68 {dimension_numbers = #tpu.dot_dimension_numbers<[2], [2], [1], [1], [0, 0, 0, 1, 1, 1], [0], [0]>} : vector<8x8x8xf32>, vector<8x8x8xf32>, vector<8x8x8xf32> -> vector<8x8x8xf32>
    "tpu.trace_stop"() : () -> ()
    %229 = vector.shape_cast %10 : vector<8x8xf32> to vector<1x8x8xf32>
    %230 = vector.broadcast %229 : vector<1x8x8xf32> to vector<8x8x8xf32>
    %231 = arith.addf %228, %230 : vector<8x8x8xf32>
    %cst_69 = arith.constant dense<0xFF800000> : vector<8x8xf32>
    %232 = vector.multi_reduction <maximumf>, %231, %cst_69 [2] : vector<8x8x8xf32> to vector<8x8xf32>
    %233 = vector.shape_cast %232 : vector<8x8xf32> to vector<8x8x1xf32>
    %234 = vector.broadcast %233 : vector<8x8x1xf32> to vector<8x8x8xf32>
    %235 = arith.subf %231, %234 : vector<8x8x8xf32>
    %236 = math.exp %235 : vector<8x8x8xf32>
    %cst_70 = arith.constant dense<0.000000e+00> : vector<8x8xf32>
    %237 = vector.multi_reduction <add>, %236, %cst_70 [2] : vector<8x8x8xf32> to vector<8x8xf32>
    %238 = vector.shape_cast %237 : vector<8x8xf32> to vector<8x8x1xf32>
    %239 = tpu.reciprocal %238 {approx = true} : vector<8x8x1xf32> -> vector<8x8x1xf32>
    %240 = vector.broadcast %239 : vector<8x8x1xf32> to vector<8x8x8xf32>
    %241 = arith.mulf %236, %240 : vector<8x8x8xf32>
    "tpu.trace_start"() <{level = 10 : i32, message = "nqk,nkd->nqd"}> : () -> ()
    %cst_71 = arith.constant dense<0.000000e+00> : vector<8x8x8xf32>
    %242 = tpu.matmul %241, %227, %cst_71 {dimension_numbers = #tpu.dot_dimension_numbers<[2], [1], [1], [2], [0, 0, 0, 1, 1, 2], [0], [0]>} : vector<8x8x8xf32>, vector<8x8x8xf32>, vector<8x8x8xf32> -> vector<8x8x8xf32>
    "tpu.trace_stop"() : () -> ()
    %243 = vector.extract_strided_slice %242 {offsets = [0, 0, 0], sizes = [2, 8, 8], strides = [1, 1, 1]} : vector<8x8x8xf32> to vector<2x8x8xf32>
    %244 = vector.shape_cast %243 : vector<2x8x8xf32> to vector<16x8xf32>
    %245 = vector.extract_strided_slice %242 {offsets = [2, 0, 0], sizes = [2, 8, 8], strides = [1, 1, 1]} : vector<8x8x8xf32> to vector<2x8x8xf32>
    %246 = vector.shape_cast %245 : vector<2x8x8xf32> to vector<16x8xf32>
    %247 = vector.extract_strided_slice %242 {offsets = [4, 0, 0], sizes = [2, 8, 8], strides = [1, 1, 1]} : vector<8x8x8xf32> to vector<2x8x8xf32>
    %248 = vector.shape_cast %247 : vector<2x8x8xf32> to vector<16x8xf32>
    %249 = vector.extract_strided_slice %242 {offsets = [6, 0, 0], sizes = [2, 8, 8], strides = [1, 1, 1]} : vector<8x8x8xf32> to vector<2x8x8xf32>
    %250 = vector.shape_cast %249 : vector<2x8x8xf32> to vector<16x8xf32>
    %251 = tpu.concatenate %244, %246, %248, %250 in 1 : vector<16x8xf32>, vector<16x8xf32>, vector<16x8xf32>, vector<16x8xf32> -> vector<16x32xf32>
    %c1_72 = arith.constant 1 : index
    %c0_73 = arith.constant 0 : index
    %c0_74 = arith.constant 0 : index
    %252 = vector.load %arg6[%c1_72, %c0_73, %c0_74] : memref<2x32x32xf32, #tpu.memory_space<vmem>>, vector<1x32x32xf32>
    %253 = vector.shape_cast %252 : vector<1x32x32xf32> to vector<32x32xf32>
    %cst_75 = arith.constant dense<0.000000e+00> : vector<16x32xf32>
    %254 = tpu.matmul %251, %253, %cst_75 {dimension_numbers = #tpu.dot_dimension_numbers<[1], [0], [0], [1], [0, 0, 1, 1], [], []>} : vector<16x32xf32>, vector<32x32xf32>, vector<16x32xf32> -> vector<16x32xf32>
    %c1_76 = arith.constant 1 : index
    %c0_77 = arith.constant 0 : index
    %255 = vector.load %arg7[%c1_76, %c0_77] : memref<2x32xf32, #tpu.memory_space<vmem>>, vector<1x32xf32>
    %256 = vector.shape_cast %255 : vector<1x32xf32> to vector<32xf32>
    %257 = vector.shape_cast %256 : vector<32xf32> to vector<1x32xf32>
    %258 = vector.broadcast %257 : vector<1x32xf32> to vector<16x32xf32>
    %259 = arith.addf %254, %258 : vector<16x32xf32>
    %260 = vector.shape_cast %259 : vector<16x32xf32> to vector<2x8x32xf32>
    %261 = arith.addf %163, %260 : vector<2x8x32xf32>
    %c1_78 = arith.constant 1 : index
    %c0_79 = arith.constant 0 : index
    %262 = vector.load %arg8[%c1_78, %c0_79] : memref<2x32xf32, #tpu.memory_space<vmem>>, vector<1x32xf32>
    %263 = vector.shape_cast %262 : vector<1x32xf32> to vector<32xf32>
    %c1_80 = arith.constant 1 : index
    %c0_81 = arith.constant 0 : index
    %264 = vector.load %arg9[%c1_80, %c0_81] : memref<2x32xf32, #tpu.memory_space<vmem>>, vector<1x32xf32>
    %265 = vector.shape_cast %264 : vector<1x32xf32> to vector<32xf32>
    %cst_82 = arith.constant dense<0.000000e+00> : vector<2x8xf32>
    %266 = vector.multi_reduction <add>, %261, %cst_82 [2] : vector<2x8x32xf32> to vector<2x8xf32>
    %267 = vector.shape_cast %266 : vector<2x8xf32> to vector<2x8x1xf32>
    %cst_83 = arith.constant 3.200000e+01 : f32
    %268 = vector.broadcast %cst_83 : f32 to vector<2x8x1xf32>
    %269 = arith.divf %267, %268 : vector<2x8x1xf32>
    %270 = vector.broadcast %269 : vector<2x8x1xf32> to vector<2x8x32xf32>
    %271 = arith.subf %261, %270 : vector<2x8x32xf32>
    %272 = arith.mulf %271, %271 : vector<2x8x32xf32>
    %cst_84 = arith.constant dense<0.000000e+00> : vector<2x8xf32>
    %273 = vector.multi_reduction <add>, %272, %cst_84 [2] : vector<2x8x32xf32> to vector<2x8xf32>
    %274 = vector.shape_cast %273 : vector<2x8xf32> to vector<2x8x1xf32>
    %cst_85 = arith.constant 3.200000e+01 : f32
    %275 = vector.broadcast %cst_85 : f32 to vector<2x8x1xf32>
    %276 = arith.divf %274, %275 : vector<2x8x1xf32>
    %277 = vector.broadcast %269 : vector<2x8x1xf32> to vector<2x8x32xf32>
    %278 = arith.subf %261, %277 : vector<2x8x32xf32>
    %cst_86 = arith.constant 9.99999974E-6 : f32
    %279 = vector.broadcast %cst_86 : f32 to vector<2x8x1xf32>
    %280 = arith.addf %276, %279 : vector<2x8x1xf32>
    %281 = math.rsqrt %280 : vector<2x8x1xf32>
    %282 = vector.broadcast %281 : vector<2x8x1xf32> to vector<2x8x32xf32>
    %283 = arith.mulf %278, %282 : vector<2x8x32xf32>
    %284 = vector.shape_cast %263 : vector<32xf32> to vector<1x1x32xf32>
    %285 = vector.broadcast %284 : vector<1x1x32xf32> to vector<2x8x32xf32>
    %286 = arith.mulf %283, %285 : vector<2x8x32xf32>
    %287 = vector.shape_cast %265 : vector<32xf32> to vector<1x1x32xf32>
    %288 = vector.broadcast %287 : vector<1x1x32xf32> to vector<2x8x32xf32>
    %289 = arith.addf %286, %288 : vector<2x8x32xf32>
    %290 = vector.shape_cast %289 : vector<2x8x32xf32> to vector<16x32xf32>
    %c1_87 = arith.constant 1 : index
    %c0_88 = arith.constant 0 : index
    %c0_89 = arith.constant 0 : index
    %291 = vector.load %arg10[%c1_87, %c0_88, %c0_89] : memref<2x32x128xf32, #tpu.memory_space<vmem>>, vector<1x32x128xf32>
    %292 = vector.shape_cast %291 : vector<1x32x128xf32> to vector<32x128xf32>
    %cst_90 = arith.constant dense<0.000000e+00> : vector<16x128xf32>
    %293 = tpu.matmul %290, %292, %cst_90 {dimension_numbers = #tpu.dot_dimension_numbers<[1], [0], [0], [1], [0, 0, 1, 1], [], []>} : vector<16x32xf32>, vector<32x128xf32>, vector<16x128xf32> -> vector<16x128xf32>
    %c1_91 = arith.constant 1 : index
    %c0_92 = arith.constant 0 : index
    %294 = vector.load %arg11[%c1_91, %c0_92] : memref<2x128xf32, #tpu.memory_space<vmem>>, vector<1x128xf32>
    %295 = vector.shape_cast %294 : vector<1x128xf32> to vector<128xf32>
    %296 = vector.shape_cast %295 : vector<128xf32> to vector<1x128xf32>
    %297 = vector.broadcast %296 : vector<1x128xf32> to vector<16x128xf32>
    %298 = arith.addf %293, %297 : vector<16x128xf32>
    %cst_93 = arith.constant 5.000000e-01 : f32
    %299 = vector.broadcast %cst_93 : f32 to vector<16x128xf32>
    %300 = arith.mulf %299, %298 : vector<16x128xf32>
    %cst_94 = arith.constant 0.707106769 : f32
    %301 = vector.broadcast %cst_94 : f32 to vector<16x128xf32>
    %302 = arith.mulf %298, %301 : vector<16x128xf32>
    %303 = math.erf %302 : vector<16x128xf32>
    %cst_95 = arith.constant 1.000000e+00 : f32
    %304 = vector.broadcast %cst_95 : f32 to vector<16x128xf32>
    %305 = arith.addf %304, %303 : vector<16x128xf32>
    %306 = arith.mulf %300, %305 : vector<16x128xf32>
    %c1_96 = arith.constant 1 : index
    %c0_97 = arith.constant 0 : index
    %c0_98 = arith.constant 0 : index
    %307 = vector.load %arg12[%c1_96, %c0_97, %c0_98] : memref<2x128x32xf32, #tpu.memory_space<vmem>>, vector<1x128x32xf32>
    %308 = vector.shape_cast %307 : vector<1x128x32xf32> to vector<128x32xf32>
    %cst_99 = arith.constant dense<0.000000e+00> : vector<16x32xf32>
    %309 = tpu.matmul %306, %308, %cst_99 {dimension_numbers = #tpu.dot_dimension_numbers<[1], [0], [0], [1], [0, 0, 1, 1], [], []>} : vector<16x128xf32>, vector<128x32xf32>, vector<16x32xf32> -> vector<16x32xf32>
    %c1_100 = arith.constant 1 : index
    %c0_101 = arith.constant 0 : index
    %310 = vector.load %arg13[%c1_100, %c0_101] : memref<2x32xf32, #tpu.memory_space<vmem>>, vector<1x32xf32>
    %311 = vector.shape_cast %310 : vector<1x32xf32> to vector<32xf32>
    %312 = vector.shape_cast %311 : vector<32xf32> to vector<1x32xf32>
    %313 = vector.broadcast %312 : vector<1x32xf32> to vector<16x32xf32>
    %314 = arith.addf %309, %313 : vector<16x32xf32>
    %315 = vector.shape_cast %314 : vector<16x32xf32> to vector<2x8x32xf32>
    %316 = arith.addf %261, %315 : vector<2x8x32xf32>
    %c0_102 = arith.constant 0 : index
    %c0_103 = arith.constant 0 : index
    %317 = vector.load %arg14[%c0_102, %c0_103] : memref<1x32xf32, #tpu.memory_space<vmem>>, vector<1x32xf32>
    %c0_104 = arith.constant 0 : index
    %c0_105 = arith.constant 0 : index
    %318 = vector.load %arg15[%c0_104, %c0_105] : memref<1x32xf32, #tpu.memory_space<vmem>>, vector<1x32xf32>
    %cst_106 = arith.constant dense<0.000000e+00> : vector<2x8xf32>
    %319 = vector.multi_reduction <add>, %316, %cst_106 [2] : vector<2x8x32xf32> to vector<2x8xf32>
    %320 = vector.shape_cast %319 : vector<2x8xf32> to vector<2x8x1xf32>
    %cst_107 = arith.constant 3.200000e+01 : f32
    %321 = vector.broadcast %cst_107 : f32 to vector<2x8x1xf32>
    %322 = arith.divf %320, %321 : vector<2x8x1xf32>
    %323 = vector.broadcast %322 : vector<2x8x1xf32> to vector<2x8x32xf32>
    %324 = arith.subf %316, %323 : vector<2x8x32xf32>
    %325 = arith.mulf %324, %324 : vector<2x8x32xf32>
    %cst_108 = arith.constant dense<0.000000e+00> : vector<2x8xf32>
    %326 = vector.multi_reduction <add>, %325, %cst_108 [2] : vector<2x8x32xf32> to vector<2x8xf32>
    %327 = vector.shape_cast %326 : vector<2x8xf32> to vector<2x8x1xf32>
    %cst_109 = arith.constant 3.200000e+01 : f32
    %328 = vector.broadcast %cst_109 : f32 to vector<2x8x1xf32>
    %329 = arith.divf %327, %328 : vector<2x8x1xf32>
    %330 = vector.broadcast %322 : vector<2x8x1xf32> to vector<2x8x32xf32>
    %331 = arith.subf %316, %330 : vector<2x8x32xf32>
    %cst_110 = arith.constant 9.99999974E-6 : f32
    %332 = vector.broadcast %cst_110 : f32 to vector<2x8x1xf32>
    %333 = arith.addf %329, %332 : vector<2x8x1xf32>
    %334 = math.rsqrt %333 : vector<2x8x1xf32>
    %335 = vector.broadcast %334 : vector<2x8x1xf32> to vector<2x8x32xf32>
    %336 = arith.mulf %331, %335 : vector<2x8x32xf32>
    %337 = vector.shape_cast %317 : vector<1x32xf32> to vector<1x1x32xf32>
    %338 = vector.broadcast %337 : vector<1x1x32xf32> to vector<2x8x32xf32>
    %339 = arith.mulf %336, %338 : vector<2x8x32xf32>
    %340 = vector.shape_cast %318 : vector<1x32xf32> to vector<1x1x32xf32>
    %341 = vector.broadcast %340 : vector<1x1x32xf32> to vector<2x8x32xf32>
    %342 = arith.addf %339, %341 : vector<2x8x32xf32>
    %343 = vector.shape_cast %342 : vector<2x8x32xf32> to vector<16x32xf32>
    %c0_111 = arith.constant 0 : index
    %c0_112 = arith.constant 0 : index
    %344 = vector.load %arg16[%c0_111, %c0_112] : memref<32x128xf32, #tpu.memory_space<vmem>>, vector<32x128xf32>
    %cst_113 = arith.constant dense<0.000000e+00> : vector<16x128xf32>
    %345 = tpu.matmul %343, %344, %cst_113 {dimension_numbers = #tpu.dot_dimension_numbers<[1], [0], [0], [1], [0, 0, 1, 1], [], []>} : vector<16x32xf32>, vector<32x128xf32>, vector<16x128xf32> -> vector<16x128xf32>
    %c0_114 = arith.constant 0 : index
    %c0_115 = arith.constant 0 : index
    %346 = vector.load %arg17[%c0_114, %c0_115] : memref<1x128xf32, #tpu.memory_space<vmem>>, vector<1x128xf32>
    %347 = vector.broadcast %346 : vector<1x128xf32> to vector<16x128xf32>
    %348 = arith.addf %345, %347 : vector<16x128xf32>
    %349 = vector.shape_cast %348 : vector<16x128xf32> to vector<2x8x128xf32>
    %c0_116 = arith.constant 0 : index
    %c0_117 = arith.constant 0 : index
    %c0_118 = arith.constant 0 : index
    %350 = vector.load %arg18[%c0_116, %c0_117, %c0_118] : memref<2x8x128xf32, #tpu.memory_space<vmem>>, vector<2x8x128xf32>
    tpu.vector_store %arg18[%c0_116, %c0_117, %c0_118], %349 {strides = array<i32>} : memref<2x8x128xf32, #tpu.memory_space<vmem>>, vector<2x8x128xf32>,
    return
  }
}

</mosaic_0001>

<bundles_post_ra>
// kernel: gpt_forward.1
= control target key start
LH: loop header
LB: loop body
LE: loop exit
PB: predicated region body
PF: predicated region fallthrough
CT: control target
= control target key end

     0   :  { %s3017_s0 = inlined_call_operand.vmem [shape: f32[2,8,32], index: 0, kind: input, shape index: {}]   ;;  %s3018_s1 = inlined_call_operand.vmem [shape: f32[8,32], index: 1, kind: input, shape index: {}]   ;;  %s3019_s2 = inlined_call_operand.vmem [shape: f32[2,32], index: 2, kind: input, shape index: {}]   ;;  %s3020_s3 = inlined_call_operand.vmem [shape: f32[2,32], index: 3, kind: input, shape index: {}]   ;;  %s3021_s4 = inlined_call_operand.vmem [shape: f32[2,32,96], index: 4, kind: input, shape index: {}]   ;;  %s3022_s5 = inlined_call_operand.vmem [shape: f32[2,96], index: 5, kind: input, shape index: {}]   ;;  %s3023_s6 = inlined_call_operand.vmem [shape: f32[2,32,32], index: 6, kind: input, shape index: {}]   ;;  %s3024_s7 = inlined_call_operand.vmem [shape: f32[2,32], index: 7, kind: input, shape index: {}]   ;;  %s3025_s8 = inlined_call_operand.vmem [shape: f32[2,32], index: 8, kind: input, shape index: {}]   ;;  %s3026_s9 = inlined_call_operand.vmem [shape: f32[2,32], index: 9, kind: input, shape index: {}]   ;;  %s3027_s10 = inlined_call_operand.vmem [shape: f32[2,32,128], index: 10, kind: input, shape index: {}]   ;;  %s3028_s11 = inlined_call_operand.vmem [shape: f32[2,128], index: 11, kind: input, shape index: {}]   ;;  %s3029_s12 = inlined_call_operand.vmem [shape: f32[2,128,32], index: 12, kind: input, shape index: {}]   ;;  %s3030_s13 = inlined_call_operand.vmem [shape: f32[2,32], index: 13, kind: input, shape index: {}]   ;;  %s3031_s14 = inlined_call_operand.vmem [shape: f32[1,32], index: 14, kind: input, shape index: {}]   ;;  %s3032_s15 = inlined_call_operand.vmem [shape: f32[1,32], index: 15, kind: input, shape index: {}]   ;;  %s3033_s16 = inlined_call_operand.vmem [shape: f32[32,128], index: 16, kind: input, shape index: {}]   ;;  %s3034_s17 = inlined_call_operand.vmem [shape: f32[1,128], index: 17, kind: input, shape index: {}]   ;;  %s3035_s18 = inlined_call_operand.hbm [shape: f32[2,8,128], index: 18, kind: output, shape index: {}]  }
   0x1   :  { %3045 = sst [smem:[#allocation5_spill]] %s3017_s0 }
   0x2   :  { %3046 = sst [smem:[#allocation6_spill]] %s3018_s1 }
   0x3   :  { %3047 = sst [smem:[#allocation7_spill]] %s3019_s2 }
   0x4   :  { %3048 = sst [smem:[#allocation8_spill]] %s3030_s13 }
   0x5   :  { %s3049_s29 = sld [smem:[#allocation5_spill]]  ;;  %vm73_vm0 = vcmask 261120  }
   0x6   :  { %s3050_s13 = sld [smem:[#allocation6_spill]] }
   0xb   :  { %v60_v0 = vld [vmem:[%s3049_s29] sm:$0xff]  ;;  %v61_v2 = vld [vmem:[%s3049_s29 + $0x8] sm:$0xff] }
   0xc   :  { %v62_v1 = vld [vmem:[%s3050_s13] sm:$0xff] }
   0xd   :  { %v2370_v3 = vadd.f32 %v62_v1, %v60_v0  ;;  %v2374_v5 = vadd.f32 %v62_v1, %v61_v2 }
   0xf   :  { %v74_v4 = vsel %vm73_vm0, %v2370_v3, 0.0 }
  0x10   :  { %75 = vadd.xlane.f32.xlu0 %v74_v4 }
  0x11   :  { %23 = vsyncpa [#allocation3], 0  ;;  %v77_v6 = vsel %vm73_vm0, %v2374_v5, 0.0  ;;  %v2254_v7 = vmov 32.0   ;;  %v134_v24 = vld [vmem:[%s3021_s4 + $0x18] sm:$0xff]  ;;  %v133_v25 = vld [vmem:[%s3021_s4 + $0x10] sm:$0xff] }
  0x12   :  { %2134 = vrcp.f32 %v2254_v7  ;;  %155 = vmatpush.msra.mxu0 %v134_v24  ;;  %v132_v26 = vld [vmem:[%s3021_s4 + $0x8] sm:$0xff]  ;;  %v131_v27 = vld [vmem:[%s3021_s4] sm:$0xff]  ;;  %s3051_s28 = sld [smem:[#allocation7_spill]]  ;;  %s2255_s1 = smov 120   ;;  %vm182_vm8 = vcmask 64512   ;;  %vm711_vm10 = vcmask 130048  }
  0x13   :  { %v2116_v46 = vld [vmem:[%s3020_s3] ss:$0 sm:$0xff]  ;;  %s2256_s13 = smov 112   ;;  %s2257_s20 = smov 104   ;;  %vm714_vm11 = vcmask 195584  }
  0x14   :  { %156 = vmatpush.msra.mxu0 %v133_v25  ;;  %v2117_v56 = vld [vmem:[%s3022_s5] ss:$0 sm:$0xff]  ;;  %s2258_s21 = smov 96   ;;  %s2260_s22 = smov 64  }
  0x15   :  { %s3043_s2 = smov 8   ;;  %s3041_s23 = smov 24  }
  0x16   :  { %157 = vmatpush.msra.mxu0 %v132_v26  ;;  %s3039_s26 = smov 16   ;;  %s1967_s0 = sshll.u32 %s3035_s18, 4  ;;  %s1968_s0 = int_to_ptr.hbm [resolvable:$true] %s1967_s0 }
  0x17   :  { %s2265_s19 = smov 128  }
  0x18   :  { %78 = vadd.xlane.f32.xlu0 %v77_v6  ;;  %v2135_v8 = vpop.eup %2134  ;;  %158 = vmatpush.msra.mxu0 %v131_v27  ;;  %v2115_v42 = vld [vmem:[%s3051_s28] ss:$0 sm:$0xff] }
  0x19   :  { %v81_v9 = vmul.f32 32.0, %v2135_v8  ;;  %vm85_vm1 = vweird.f32 %v2135_v8 }
  0x1b   :  { %v82_v10 = vsub.f32 1.0, %v81_v9 }
  0x1d   :  { %v83_v11 = vmul.f32 %v2135_v8, %v82_v10 }
  0x1f   :  { %v84_v12 = vadd.f32 %v2135_v8, %v83_v11 }
  0x21   :  { %v2378_v13 = vsel %vm85_vm1, %v2135_v8, %v84_v12  ;;  %v65_v12 = vlaneseq }
  0x83   :  { %v76_v14 = vpop.xlane.xlu0 %75 }
  0x84   :  { %v87_v15 = vmul.f32 %v2378_v13, %v76_v14 }
  0x86   :  { %v89_v16 = vsub.f32 %v2370_v3, %v87_v15  ;;  %v66_v15 = vshrl.u32 %v65_v12, 7 }
  0x88   :  { %v91_v17 = vmul.f32 %v89_v16, %v89_v16 }
  0x8a   :  { %v93_v18 = vsel %vm73_vm0, %v91_v17, 0.0  ;;  %v2259_v17 = vmov -1e+30  }
  0x8b   :  { %94 = vadd.xlane.f32.xlu1 %v93_v18  ;;  %v79_v19 = vpop.xlane.xlu0 %78 }
  0x8c   :  { %v88_v20 = vmul.f32 %v2378_v13, %v79_v19 }
  0x8e   :  { %v90_v21 = vsub.f32 %v2374_v5, %v88_v20 }
  0x90   :  { %v92_v22 = vmul.f32 %v90_v21, %v90_v21 }
  0x92   :  { %v96_v23 = vsel %vm73_vm0, %v92_v22, 0.0 }
  0x93   :  { %97 = vadd.xlane.f32.xlu1 %v96_v23 }
  0xfe   :  { %v95_v28 = vpop.xlane.xlu1 %94 }
  0xff   :  { %v99_v29 = vmul.f32 %v95_v28, %v2378_v13 }
 0x101   :  { %v101_v30 = vadd.f32 1e-05, %v99_v29 }
 0x103   :  { %2136 = vrsqrt.f32 %v101_v30  ;;  %vm109_vm3 = vweird.f32 %v101_v30 }
 0x106   :  { %v98_v31 = vpop.xlane.xlu1 %97 }
 0x107   :  { %v100_v32 = vmul.f32 %v98_v31, %v2378_v13 }
 0x109   :  { %v2137_v33 = vpop.eup %2136  ;;  %v102_v34 = vadd.f32 1e-05, %v100_v32 }
 0x10a   :  { %v104_v35 = vmul.f32 %v2137_v33, %v101_v30  ;;  %vm110_vm2 = vweird.f32 %v2137_v33 }
 0x10b   :  { %2138 = vrsqrt.f32 %v102_v34  ;;  %vm111_vm4 = vmor %vm109_vm3, %vm110_vm2  ;;  %vm119_vm6 = vweird.f32 %v102_v34 }
 0x10c   :  { %v105_v36 = vmul.f32 %v2137_v33, %v104_v35 }
 0x10e   :  { %v106_v37 = vmul.f32 0.5, %v105_v36 }
 0x110   :  { %v107_v38 = vsub.f32 1.5, %v106_v37 }
 0x111   :  { %v2139_v39 = vpop.eup %2138 }
 0x112   :  { %v108_v40 = vmul.f32 %v2137_v33, %v107_v38  ;;  %v114_v41 = vmul.f32 %v2139_v39, %v102_v34  ;;  %vm120_vm5 = vweird.f32 %v2139_v39 }
 0x113   :  { %vm121_vm7 = vmor %vm119_vm6, %vm120_vm5 }
 0x114   :  { %v112_v43 = vsel %vm111_vm4, %v2137_v33, %v108_v40  ;;  %v115_v44 = vmul.f32 %v2139_v39, %v114_v41 }
 0x115   :  { %v123_v45 = vmul.f32 %v112_v43, %v89_v16  ;;  %v68_v16 = vand.u32 127, %v65_v12 }
 0x116   :  { %v116_v47 = vmul.f32 0.5, %v115_v44 }
 0x117   :  { %v126_v48 = vmul.f32 %v2115_v42, %v123_v45  ;;  %vm69_vm9 = vcmp.ge.s32.totalorder %v66_v15, %v68_v16 }
 0x118   :  { %v117_v49 = vsub.f32 1.5, %v116_v47  ;;  %v2479_v18 = vsel %vm69_vm9, 0.0, %v2259_v17 }
 0x119   :  { %v129_v50 = vadd.f32 %v2116_v46, %v126_v48 }
 0x11a   :  { %v118_v51 = vmul.f32 %v2139_v39, %v117_v49 }
 0x11b   :  { %1979 = vmatmul.msk.f32.vlgmr.msra.gmra.mxu0 %vm73_vm0, %v129_v50 }
 0x11c   :  { %v122_v52 = vsel %vm121_vm7, %v2139_v39, %v118_v51 }
 0x11d   :  { %v124_v53 = vmul.f32 %v122_v52, %v90_v21 }
 0x11f   :  { %v127_v54 = vmul.f32 %v2115_v42, %v124_v53 }
 0x121   :  { %v130_v55 = vadd.f32 %v2116_v46, %v127_v54 }
 0x123   :  { %1980 = vmatmul.msk.f32.gmra.mxu0 %vm73_vm0, %v130_v55 }
 0x198   :  { %v160_v57 = vpop.f32.mrf.mxu0 }
 0x199   :  { %v2411_v58 = vadd.f32 %v2117_v56, %v160_v57 }
 0x19b   :  { %168 = vrot.lane.b32.xlu2 %v2411_v58, %s2255_s1 }
 0x1a0   :  { %v163_v59 = vpop.f32.mrf.mxu0 }
 0x1a1   :  { %v2415_v60 = vadd.f32 %v2117_v56, %v163_v59 }
 0x1a3   :  { %172 = vrot.lane.b32.xlu2 %v2411_v58, %s2256_s13  ;;  %178 = vrot.lane.b32.xlu1 %v2415_v60, %s2257_s20 }
 0x1a4   :  { %170 = vrot.lane.b32.xlu0 %v2415_v60, %s2255_s1 }
 0x1ab   :  { %176 = vrot.lane.b32.xlu2 %v2411_v58, %s2257_s20 }
 0x1ac   :  { %180 = vrot.lane.b32.xlu0 %v2411_v58, %s2258_s21 }
 0x1b3   :  { %174 = vrot.lane.b32.xlu2 %v2415_v60, %s2256_s13 }
 0x1bb   :  { %207 = vrot.lane.b32.xlu2 %v2415_v60, %s2258_s21 }
 0x1f5   :  { %v2431_v61 = vpop.permute.xlu2 %168 }
 0x1f6   :  { %233 = vrot.lane.b32.xlu2 %v2431_v61, %s2258_s21  ;;  %v2085_v53 = vpack.i.bf16 %v2431_v61, %v2411_v58 }
 0x1fd   :  { %v2435_v62 = vpop.permute.xlu2 %172 }
 0x1fe   :  { %285 = vrot.lane.b32.xlu1 %v2435_v62, %s2258_s21 }
 0x205   :  { %v2439_v63 = vpop.permute.xlu2 %176 }
 0x206   :  { %337 = vrot.lane.b32.xlu1 %v2439_v63, %s2258_s21 }
 0x20d   :  { %v2443_v0 = vpop.permute.xlu2 %174 }
 0x215   :  { %v208_v1 = vpop.permute.xlu2 %207  ;;  %v2445_v2 = vpop.permute.xlu1 %178 }
 0x216   :  { %v2447_v4 = vpop.permute.xlu0 %170  ;;  %1983 = vmatpush.xpose.msk.msra.mxu3 %vm182_vm8, %v208_v1  ;;  %363 = vrot.lane.b32.xlu2 %v2445_v2, %s2258_s21 }
 0x217   :  { %259 = vrot.lane.b32.xlu0 %v2447_v4, %s2258_s21 }
 0x219   :  { %1984 = vmatmul.msk.f32.vlgmr.msra.gmra.mxu3 %vm182_vm8, %v2415_v60 }
 0x21e   :  { %v181_v6 = vpop.permute.xlu0 %180 }
 0x21f   :  { %311 = vrot.lane.b32.xlu0 %v2443_v0, %s2258_s21  ;;  %1981 = vmatpush.xpose.msk.msra.mxu1 %vm182_vm8, %v181_v6 }
 0x222   :  { %1982 = vmatmul.msk.f32.vlgmr.msra.gmra.mxu1 %vm182_vm8, %v2411_v58 }
 0x250   :  { %v234_v7 = vpop.permute.xlu2 %233 }
 0x251   :  { %1985 = vmatpush.xpose.msk.msrb.mxu3 %vm182_vm8, %v234_v7  ;;  %v2095_v7 = vpack.i.bf16 %v2439_v63, %v2415_v60 }
 0x254   :  { %1986 = vmatmul.msk.f32.vlgmr.msrb.gmra.mxu3 %vm182_vm8, %v2431_v61 }
 0x270   :  { %v364_v8 = vpop.permute.xlu2 %363  ;;  %v286_v9 = vpop.permute.xlu1 %285 }
 0x271   :  { %1989 = vmatpush.xpose.msk.msra.mxu2 %vm182_vm8, %v286_v9 }
 0x274   :  { %1990 = vmatmul.msk.f32.vlgmr.msra.gmra.mxu2 %vm182_vm8, %v2435_v62 }
 0x275   :  { %1995 = vmatpush.xpose.msk.msrb.mxu2 %vm182_vm8, %v364_v8 }
 0x278   :  { %v338_v11 = vpop.permute.xlu1 %337 }
 0x27c   :  { %1996 = vmatmul.msk.f32.vlgmr.msrb.gmra.mxu2 %vm182_vm8, %v2445_v2 }
 0x289   :  { %v260_v10 = vpop.permute.xlu0 %259 }
 0x28a   :  { %1987 = vmatpush.xpose.msk.msrb.mxu1 %vm182_vm8, %v260_v10 }
 0x28d   :  { %1988 = vmatmul.msk.f32.vlgmr.msrb.gmra.mxu1 %vm182_vm8, %v2447_v4 }
 0x28e   :  { %1993 = vmatpush.xpose.msk.msra.mxu1 %vm182_vm8, %v338_v11 }
 0x291   :  { %v312_v14 = vpop.permute.xlu0 %311 }
 0x292   :  { %1991 = vmatpush.xpose.msk.msra.mxu3 %vm182_vm8, %v312_v14 }
 0x295   :  { %1992 = vmatmul.msk.f32.vlgmr.msra.gmra.mxu3 %vm182_vm8, %v2443_v0  ;;  %1994 = vmatmul.msk.f32.vlgmr.msra.gmra.mxu1 %vm182_vm8, %v2439_v63 }
 0x29c   :  { %v230_v19 = vpop.f32.mrf.mxu3 }
 0x29d   :  { %v231_v20 = vadd.f32 %v230_v19, %v2479_v18 }
 0x29f   :  { %v204_v21 = vpop.f32.mrf.mxu1  ;;  %v392_v22 = vsel %vm182_vm8, %v231_v20, -inf }
 0x2a0   :  { %v205_v23 = vadd.f32 %v204_v21, %v2479_v18  ;;  %393 = vmax.xlane.f32.xlu1 %v392_v22 }
 0x2a2   :  { %v389_v24 = vsel %vm182_vm8, %v205_v23, -inf }
 0x2a3   :  { %390 = vmax.xlane.f32.xlu2 %v389_v24 }
 0x2d7   :  { %v256_v25 = vpop.f32.mrf.mxu3 }
 0x2d8   :  { %v257_v26 = vadd.f32 %v256_v25, %v2479_v18 }
 0x2da   :  { %v395_v27 = vsel %vm182_vm8, %v257_v26, -inf }
 0x2db   :  { %396 = vmax.xlane.f32.xlu1 %v395_v27 }
 0x2f7   :  { %v308_v28 = vpop.f32.mrf.mxu2 }
 0x2f8   :  { %v309_v29 = vadd.f32 %v308_v28, %v2479_v18 }
 0x2fa   :  { %v401_v30 = vsel %vm182_vm8, %v309_v29, -inf }
 0x2fb   :  { %402 = vmax.xlane.f32.xlu0 %v401_v30 }
 0x2ff   :  { %v386_v34 = vpop.f32.mrf.mxu2 }
 0x300   :  { %v387_v35 = vadd.f32 %v386_v34, %v2479_v18  ;;  %v2090_v34 = vpack.i.bf16 %v2447_v4, %v2435_v62 }
 0x302   :  { %v410_v38 = vsel %vm182_vm8, %v387_v35, -inf }
 0x30a   :  { %v282_v31 = vpop.f32.mrf.mxu1 }
 0x30b   :  { %v283_v32 = vadd.f32 %v282_v31, %v2479_v18 }
 0x30d   :  { %v398_v33 = vsel %vm182_vm8, %v283_v32, -inf }
 0x30e   :  { %399 = vmax.xlane.f32.xlu2 %v398_v33 }
 0x312   :  { %v360_v49 = vpop.f32.mrf.mxu1 }
 0x313   :  { %v394_v36 = vpop.xlane.xlu1 %393  ;;  %v361_v51 = vadd.f32 %v360_v49, %v2479_v18 }
 0x314   :  { %v414_v37 = vsub.f32 %v231_v20, %v394_v36 }
 0x315   :  { %v407_v52 = vsel %vm182_vm8, %v361_v51, -inf }
 0x316   :  { %v423_v39 = vmul.f32 1.442695, %v414_v37  ;;  %v391_v40 = vpop.xlane.xlu2 %390  ;;  %411 = vmax.xlane.f32.xlu2 %v410_v38 }
 0x317   :  { %v413_v41 = vsub.f32 %v205_v23, %v391_v40 }
 0x318   :  { %v334_v42 = vpop.f32.mrf.mxu3  ;;  %2140 = vpow2.f32 %v423_v39 }
 0x319   :  { %v421_v43 = vmul.f32 1.442695, %v413_v41  ;;  %v335_v44 = vadd.f32 %v334_v42, %v2479_v18 }
 0x31b   :  { %2142 = vpow2.f32 %v421_v43  ;;  %v404_v45 = vsel %vm182_vm8, %v335_v44, -inf }
 0x31c   :  { %405 = vmax.xlane.f32.xlu1 %v404_v45 }
 0x31e   :  { %v2495_v46 = vpop.eup %2140 }
 0x31f   :  { %v440_v50 = vsel %vm182_vm8, %v2495_v46, 0.0 }
 0x321   :  { %v2143_v47 = vpop.eup %2142 }
 0x322   :  { %v437_v48 = vsel %vm182_vm8, %v2143_v47, 0.0 }
 0x323   :  { %438 = vadd.xlane.f32.xlu0 %v437_v48 }
 0x324   :  { %441 = vadd.xlane.f32.xlu1 %v440_v50 }
 0x32b   :  { %408 = vmax.xlane.f32.xlu0 %v407_v52 }
 0x32e   :  { %2086 = vrot.lane.b32.xlu2 %v2085_v53, %s2260_s22 }
 0x34e   :  { %v397_v54 = vpop.xlane.xlu1 %396 }
 0x34f   :  { %v415_v55 = vsub.f32 %v257_v26, %v397_v54 }
 0x351   :  { %v425_v56 = vmul.f32 1.442695, %v415_v55 }
 0x353   :  { %2144 = vpow2.f32 %v425_v56 }
 0x359   :  { %v2145_v57 = vpop.eup %2144 }
 0x35a   :  { %v443_v59 = vsel %vm182_vm8, %v2145_v57, 0.0 }
 0x35b   :  { %444 = vadd.xlane.f32.xlu2 %v443_v59 }
 0x36e   :  { %v403_v1 = vpop.xlane.xlu0 %402 }
 0x36f   :  { %v417_v6 = vsub.f32 %v309_v29, %v403_v1 }
 0x371   :  { %v429_v8 = vmul.f32 1.442695, %v417_v6 }
 0x373   :  { %2146 = vpow2.f32 %v429_v8  ;;  %2096 = vrot.lane.b32.xlu2 %v2095_v7, %s2260_s22 }
 0x379   :  { %v2509_v58 = vpop.eup %2146 }
 0x37a   :  { %v449_v61 = vsel %vm182_vm8, %v2509_v58, 0.0 }
 0x37b   :  { %607 = vrot.lane.b32.xlu2 %v2443_v0, %s2260_s22  ;;  %450 = vadd.xlane.f32.xlu1 %v449_v61  ;;  %v720_v61 = vld [vmem:[%s3023_s6 + $0x18] sm:$0xff] }
 0x381   :  { %v400_v9 = vpop.xlane.xlu2 %399 }
 0x382   :  { %v416_v10 = vsub.f32 %v283_v32, %v400_v9 }
 0x384   :  { %v427_v11 = vmul.f32 1.442695, %v416_v10 }
 0x386   :  { %2148 = vpow2.f32 %v427_v11 }
 0x389   :  { %v412_v12 = vpop.xlane.xlu2 %411 }
 0x38a   :  { %v420_v14 = vsub.f32 %v387_v35, %v412_v12 }
 0x38c   :  { %v2515_v60 = vpop.eup %2148  ;;  %v435_v63 = vmul.f32 1.442695, %v420_v14 }
 0x38d   :  { %v446_v15 = vsel %vm182_vm8, %v2515_v60, 0.0 }
 0x38e   :  { %2150 = vpow2.f32 %v435_v63  ;;  %447 = vadd.xlane.f32.xlu0 %v446_v15  ;;  %v718_v63 = vld [vmem:[%s3023_s6 + $0x8] sm:$0xff]  ;;  %v717_v15 = vld [vmem:[%s3023_s6] sm:$0xff] }
 0x38f   :  { %v406_v16 = vpop.xlane.xlu1 %405 }
 0x390   :  { %v418_v17 = vsub.f32 %v335_v44, %v406_v16 }
 0x391   :  { %v2087_v19 = vpop.permute.xlu2 %2086 }
 0x392   :  { %v431_v20 = vmul.f32 1.442695, %v418_v17  ;;  %v2089_v0 = vunpack.i.h.bf16 %v2087_v19  ;;  %v2088_v21 = vunpack.i.l.bf16 %v2087_v19 }
 0x394   :  { %v2519_v22 = vpop.eup %2150  ;;  %2152 = vpow2.f32 %v431_v20  ;;  %498 = vmatpush.msrb.mxu3 %v2088_v21  ;;  %550 = vmatpush.msrb.mxu1 %v2089_v0 }
 0x395   :  { %v458_v23 = vsel %vm182_vm8, %v2519_v22, 0.0 }
 0x396   :  { %459 = vadd.xlane.f32.xlu1 %v458_v23  ;;  %v439_v24 = vpop.xlane.xlu0 %438 }
 0x397   :  { %2154 = vrcp.f32 %v439_v24  ;;  %v442_v35 = vpop.xlane.xlu1 %441 }
 0x39a   :  { %v2153_v25 = vpop.eup %2152 }
 0x39b   :  { %v452_v27 = vsel %vm182_vm8, %v2153_v25, 0.0 }
 0x39d   :  { %v2155_v26 = vpop.eup %2154 }
 0x39e   :  { %v469_v28 = vmul.f32 %v2155_v26, %v2143_v47  ;;  %453 = vadd.xlane.f32.xlu1 %v452_v27  ;;  %v409_v29 = vpop.xlane.xlu0 %408 }
 0x39f   :  { %v419_v30 = vsub.f32 %v361_v51, %v409_v29 }
 0x3a0   :  { %1997 = vmatmul.msk.f32.vlgmr.msrb.gmra.mxu3 %vm182_vm8, %v469_v28  ;;  %v2118_v28 = vld [vmem:[%s3024_s7] ss:$0 sm:$0xff] }
 0x3a1   :  { %v433_v31 = vmul.f32 1.442695, %v419_v30 }
 0x3a3   :  { %2156 = vpow2.f32 %v433_v31 }
 0x3a4   :  { %2158 = vrcp.f32 %v442_v35 }
 0x3a9   :  { %v2157_v32 = vpop.eup %2156 }
 0x3aa   :  { %v455_v33 = vsel %vm182_vm8, %v2157_v32, 0.0  ;;  %v2159_v37 = vpop.eup %2158 }
 0x3ab   :  { %456 = vadd.xlane.f32.xlu0 %v455_v33  ;;  %v470_v43 = vmul.f32 %v2159_v37, %v2495_v46 }
 0x3b7   :  { %659 = vrot.lane.b32.xlu1 %v2445_v2, %s2260_s22 }
 0x3bf   :  { %2091 = vrot.lane.b32.xlu0 %v2090_v34, %s2260_s22 }
 0x3ce   :  { %v445_v36 = vpop.xlane.xlu2 %444 }
 0x3cf   :  { %2160 = vrcp.f32 %v445_v36 }
 0x3d5   :  { %v2161_v38 = vpop.eup %2160 }
 0x3d6   :  { %v471_v39 = vmul.f32 %v2161_v38, %v2145_v57  ;;  %v2097_v40 = vpop.permute.xlu2 %2096 }
 0x3d7   :  { %v2099_v41 = vunpack.i.h.bf16 %v2097_v40  ;;  %v2098_v42 = vunpack.i.l.bf16 %v2097_v40 }
 0x3d8   :  { %1999 = vmatmul.msk.f32.vlgmr.msrb.gmra.mxu1 %vm182_vm8, %v471_v39 }
 0x3d9   :  { %524 = vmatpush.msrb.mxu0 %v2098_v42  ;;  %654 = vmatpush.msra.mxu1 %v2099_v41 }
 0x3da   :  { %1998 = vmatmul.msk.f32.vlgmr.msrb.gmra.mxu0 %vm182_vm8, %v470_v43 }
 0x3de   :  { %v608_v62 = vpop.permute.xlu2 %607 }
 0x3df   :  { %628 = vmatpush.msra.mxu0 %v608_v62 }
 0x3ee   :  { %v451_v2 = vpop.xlane.xlu1 %450 }
 0x401   :  { %v448_v45 = vpop.xlane.xlu0 %447 }
 0x409   :  { %v460_v4 = vpop.xlane.xlu1 %459 }
 0x411   :  { %v454_v44 = vpop.xlane.xlu1 %453 }
 0x412   :  { %2162 = vrcp.f32 %v454_v44  ;;  %v807_v44 = vld [vmem:[%s3027_s10 + $0x8] sm:$0xff] }
 0x418   :  { %v2163_v47 = vpop.eup %2162 }
 0x419   :  { %v474_v48 = vmul.f32 %v2163_v47, %v2153_v25 }
 0x41b   :  { %2002 = vmatmul.msk.f32.vlgmr.msra.gmra.mxu0 %vm182_vm8, %v474_v48 }
 0x41e   :  { %v457_v49 = vpop.xlane.xlu0 %456 }
 0x41f   :  { %2164 = vrcp.f32 %v457_v49 }
 0x420   :  { %2166 = vrcp.f32 %v451_v2  ;;  %v809_v2 = vld [vmem:[%s3027_s10 + $0x18] sm:$0xff] }
 0x421   :  { %2168 = vrcp.f32 %v448_v45  ;;  %v806_v45 = vld [vmem:[%s3027_s10] sm:$0xff] }
 0x422   :  { %2170 = vrcp.f32 %v460_v4  ;;  %v808_v4 = vld [vmem:[%s3027_s10 + $0x10] sm:$0xff] }
 0x423   :  { %v500_v10 = vpop.f32.mrf.mxu3 }
 0x425   :  { %v2165_v50 = vpop.eup %2164 }
 0x426   :  { %v475_v51 = vmul.f32 %v2165_v50, %v2157_v32  ;;  %v2167_v46 = vpop.eup %2166 }
 0x427   :  { %v2169_v52 = vpop.eup %2168  ;;  %v473_v56 = vmul.f32 %v2167_v46, %v2509_v58 }
 0x428   :  { %2003 = vmatmul.msk.f32.vlgmr.msra.gmra.mxu1 %vm182_vm8, %v475_v51  ;;  %v472_v57 = vmul.f32 %v2169_v52, %v2515_v60  ;;  %v2171_v1 = vpop.eup %2170  ;;  %v719_v60 = vld [vmem:[%s3023_s6 + $0x10] sm:$0xff] }
 0x429   :  { %v660_v59 = vpop.permute.xlu1 %659  ;;  %v476_v6 = vmul.f32 %v2171_v1, %v2519_v22 }
 0x431   :  { %v2092_v53 = vpop.permute.xlu0 %2091 }
 0x432   :  { %v2094_v54 = vunpack.i.h.bf16 %v2092_v53  ;;  %v2093_v55 = vunpack.i.l.bf16 %v2092_v53 }
 0x434   :  { %576 = vmatpush.msra.mxu2 %v2094_v54  ;;  %602 = vmatpush.msra.mxu3 %v2093_v55  ;;  %v2119_v55 = vld [vmem:[%s3025_s8] ss:$0 sm:$0xff] }
 0x435   :  { %2000 = vmatmul.msk.f32.vlgmr.msra.gmra.mxu2 %vm182_vm8, %v472_v57  ;;  %2001 = vmatmul.msk.f32.vlgmr.msra.gmra.mxu3 %vm182_vm8, %v473_v56 }
 0x436   :  { %680 = vmatpush.msrb.mxu2 %v660_v59  ;;  %741 = vmatpush.msrb.mxu3 %v720_v61  ;;  %v2120_v59 = vld [vmem:[%s3026_s9] ss:$0 sm:$0xff] }
 0x438   :  { %742 = vmatpush.msrb.mxu3 %v719_v60  ;;  %830 = vmatpush.msra.mxu2 %v809_v2  ;;  %v931_v2 = vld [vmem:[%s3029_s12 + $0x10] sm:$0xff] }
 0x43a   :  { %743 = vmatpush.msrb.mxu3 %v718_v63  ;;  %831 = vmatpush.msra.mxu2 %v808_v4 }
 0x43c   :  { %744 = vmatpush.msrb.mxu3 %v717_v15  ;;  %832 = vmatpush.msra.mxu2 %v807_v44 }
 0x43d   :  { %2004 = vmatmul.msk.f32.vlgmr.msrb.gmra.mxu2 %vm182_vm8, %v476_v6 }
 0x43e   :  { %833 = vmatpush.msra.mxu2 %v806_v45  ;;  %v930_v45 = vld [vmem:[%s3029_s12 + $0x8] sm:$0xff] }
 0x455   :  { %v552_v7 = vpop.f32.mrf.mxu1 }
 0x456   :  { %687 = vrot.lane.b32.xlu0 %v552_v7, %s3043_s2 }
 0x457   :  { %v526_v8 = vpop.f32.mrf.mxu0 }
 0x498   :  { %v630_v9 = vpop.f32.mrf.mxu0 }
 0x4a5   :  { %v656_v58 = vpop.f32.mrf.mxu1 }
 0x4a6   :  { %703 = vrot.lane.b32.xlu0 %v656_v58, %s3041_s23 }
 0x4ae   :  { %697 = vrot.lane.b32.xlu0 %v630_v9, %s3039_s26 }
 0x4b8   :  { %v578_v11 = vpop.f32.mrf.mxu2  ;;  %v604_v12 = vpop.f32.mrf.mxu3 }
 0x4b9   :  { %695 = vrot.lane.b32.xlu2 %v604_v12, %s3039_s26 }
 0x4c0   :  { %v682_v14 = vpop.f32.mrf.mxu2 }
 0x4c1   :  { %705 = vrot.lane.b32.xlu1 %v682_v14, %s3041_s23  ;;  %689 = vrot.lane.b32.xlu2 %v578_v11, %s3043_s2  ;;  %s3052_s23 = sld [smem:[#allocation8_spill]] }
 0x4c8   :  { %v688_v16 = vpop.permute.xlu0 %687 }
 0x4c9   :  { %v709_v19 = vsel %vm182_vm8, %v500_v10, %v688_v16 }
 0x513   :  { %v696_v17 = vpop.permute.xlu2 %695 }
 0x514   :  { %v712_v20 = vsel %vm711_vm10, %v709_v19, %v696_v17  ;;  %v944_v17 = vld [vmem:[%s3029_s12 + $0x78] sm:$0xff]  ;;  %v943_v19 = vld [vmem:[%s3029_s12 + $0x70] sm:$0xff] }
 0x515   :  { %947 = vmatpush.msrb.mxu1 %v944_v17 }
 0x517   :  { %948 = vmatpush.msrb.mxu1 %v943_v19 }
 0x518   :  { %v704_v0 = vpop.permute.xlu0 %703 }
 0x519   :  { %v715_v21 = vsel %vm714_vm11, %v712_v20, %v704_v0  ;;  %v942_v20 = vld [vmem:[%s3029_s12 + $0x68] sm:$0xff]  ;;  %v2121_v0 = vld [vmem:[%s3028_s11] ss:$0 sm:$0xff] }
 0x51a   :  { %2005 = vmatmul.msk.f32.vlgmr.msrb.gmra.mxu3 %vm73_vm0, %v715_v21  ;;  %949 = vmatpush.msrb.mxu1 %v942_v20  ;;  %v941_v21 = vld [vmem:[%s3029_s12 + $0x60] sm:$0xff] }
 0x51b   :  { %v690_v22 = vpop.permute.xlu2 %689 }
 0x51c   :  { %v710_v24 = vsel %vm182_vm8, %v526_v8, %v690_v22  ;;  %950 = vmatpush.msrb.mxu1 %v941_v21  ;;  %v940_v22 = vld [vmem:[%s3029_s12 + $0x58] sm:$0xff] }
 0x51e   :  { %951 = vmatpush.msrb.mxu1 %v940_v22 }
 0x520   :  { %v698_v23 = vpop.permute.xlu0 %697 }
 0x521   :  { %v713_v25 = vsel %vm711_vm10, %v710_v24, %v698_v23 }
 0x533   :  { %v706_v26 = vpop.permute.xlu1 %705 }
 0x534   :  { %v716_v27 = vsel %vm714_vm11, %v713_v25, %v706_v26  ;;  %v939_v25 = vld [vmem:[%s3029_s12 + $0x50] sm:$0xff] }
 0x535   :  { %2006 = vmatmul.msk.f32.gmra.mxu3 %vm73_vm0, %v716_v27  ;;  %952 = vmatpush.msrb.mxu1 %v939_v25  ;;  %v938_v27 = vld [vmem:[%s3029_s12 + $0x48] sm:$0xff] }
 0x537   :  { %953 = vmatpush.msrb.mxu1 %v938_v27 }
 0x59d   :  { %v746_v29 = vpop.f32.mrf.mxu3 }
 0x59e   :  { %v747_v30 = vadd.f32 %v2118_v28, %v746_v29  ;;  %v937_v29 = vld [vmem:[%s3029_s12 + $0x40] sm:$0xff] }
 0x59f   :  { %954 = vmatpush.msrb.mxu1 %v937_v29 }
 0x5a0   :  { %v2572_v31 = vadd.f32 %v747_v30, %v2370_v3 }
 0x5a2   :  { %v756_v32 = vsel %vm73_vm0, %v2572_v31, 0.0 }
 0x5a3   :  { %757 = vadd.xlane.f32.xlu2 %v756_v32  ;;  %v936_v32 = vld [vmem:[%s3029_s12 + $0x38] sm:$0xff] }
 0x5a4   :  { %955 = vmatpush.msrb.mxu1 %v936_v32 }
 0x5b8   :  { %v749_v33 = vpop.f32.mrf.mxu3 }
 0x5b9   :  { %v750_v34 = vadd.f32 %v2118_v28, %v749_v33 }
 0x5bb   :  { %v2577_v35 = vadd.f32 %v750_v34, %v2374_v5 }
 0x5bd   :  { %v759_v36 = vsel %vm73_vm0, %v2577_v35, 0.0 }
 0x5be   :  { %760 = vadd.xlane.f32.xlu0 %v759_v36  ;;  %v935_v36 = vld [vmem:[%s3029_s12 + $0x30] sm:$0xff] }
 0x5bf   :  { %956 = vmatpush.msrb.mxu1 %v935_v36 }
 0x616   :  { %v758_v37 = vpop.xlane.xlu2 %757 }
 0x617   :  { %v762_v38 = vmul.f32 %v758_v37, %v2378_v13 }
 0x619   :  { %v764_v39 = vsub.f32 %v2572_v31, %v762_v38 }
 0x61b   :  { %v766_v3 = vmul.f32 %v764_v39, %v764_v39 }
 0x61d   :  { %v768_v40 = vsel %vm73_vm0, %v766_v3, 0.0 }
 0x61e   :  { %769 = vadd.xlane.f32.xlu1 %v768_v40 }
 0x631   :  { %v761_v41 = vpop.xlane.xlu0 %760 }
 0x632   :  { %v763_v42 = vmul.f32 %v761_v41, %v2378_v13  ;;  %v933_v41 = vld [vmem:[%s3029_s12 + $0x20] sm:$0xff] }
 0x634   :  { %v765_v43 = vsub.f32 %v2577_v35, %v763_v42 }
 0x636   :  { %v767_v5 = vmul.f32 %v765_v43, %v765_v43 }
 0x638   :  { %v771_v62 = vsel %vm73_vm0, %v767_v5, 0.0  ;;  %v932_v5 = vld [vmem:[%s3029_s12 + $0x18] sm:$0xff] }
 0x639   :  { %772 = vadd.xlane.f32.xlu2 %v771_v62 }
 0x691   :  { %v770_v47 = vpop.xlane.xlu1 %769 }
 0x692   :  { %v774_v48 = vmul.f32 %v770_v47, %v2378_v13 }
 0x694   :  { %v776_v49 = vadd.f32 1e-05, %v774_v48  ;;  %v929_v48 = vld [vmem:[%s3029_s12] sm:$0xff] }
 0x696   :  { %2172 = vrsqrt.f32 %v776_v49  ;;  %vm784_vm13 = vweird.f32 %v776_v49 }
 0x69c   :  { %v2173_v50 = vpop.eup %2172 }
 0x69d   :  { %v779_v51 = vmul.f32 %v2173_v50, %v776_v49  ;;  %vm785_vm12 = vweird.f32 %v2173_v50 }
 0x69e   :  { %vm786_vm14 = vmor %vm784_vm13, %vm785_vm12 }
 0x69f   :  { %v780_v46 = vmul.f32 %v2173_v50, %v779_v51 }
 0x6a1   :  { %v781_v52 = vmul.f32 0.5, %v780_v46 }
 0x6a3   :  { %v782_v53 = vsub.f32 1.5, %v781_v52 }
 0x6a5   :  { %v783_v54 = vmul.f32 %v2173_v50, %v782_v53 }
 0x6a7   :  { %v787_v56 = vsel %vm786_vm14, %v2173_v50, %v783_v54 }
 0x6a8   :  { %v798_v57 = vmul.f32 %v787_v56, %v764_v39  ;;  %v934_v39 = vld [vmem:[%s3029_s12 + $0x28] sm:$0xff] }
 0x6a9   :  { %957 = vmatpush.msrb.mxu1 %v934_v39 }
 0x6aa   :  { %v801_v1 = vmul.f32 %v2119_v55, %v798_v57 }
 0x6ab   :  { %958 = vmatpush.msrb.mxu1 %v933_v41 }
 0x6ac   :  { %v773_v6 = vpop.xlane.xlu2 %772  ;;  %v804_v7 = vadd.f32 %v2120_v59, %v801_v1 }
 0x6ad   :  { %v775_v8 = vmul.f32 %v773_v6, %v2378_v13  ;;  %959 = vmatpush.msrb.mxu1 %v932_v5 }
 0x6ae   :  { %2007 = vmatmul.msk.f32.vlgmr.msra.gmra.mxu2 %vm73_vm0, %v804_v7 }
 0x6af   :  { %v777_v58 = vadd.f32 1e-05, %v775_v8  ;;  %960 = vmatpush.msrb.mxu1 %v931_v2 }
 0x6b1   :  { %2174 = vrsqrt.f32 %v777_v58  ;;  %vm794_vm1 = vweird.f32 %v777_v58  ;;  %961 = vmatpush.msrb.mxu1 %v930_v45 }
 0x6b3   :  { %962 = vmatpush.msrb.mxu1 %v929_v48 }
 0x6b7   :  { %v2175_v61 = vpop.eup %2174 }
 0x6b8   :  { %v789_v9 = vmul.f32 %v2175_v61, %v777_v58  ;;  %vm795_vm15 = vweird.f32 %v2175_v61 }
 0x6b9   :  { %vm796_vm2 = vmor %vm794_vm1, %vm795_vm15 }
 0x6ba   :  { %v790_v10 = vmul.f32 %v2175_v61, %v789_v9 }
 0x6bc   :  { %v791_v11 = vmul.f32 0.5, %v790_v10 }
 0x6be   :  { %v792_v12 = vsub.f32 1.5, %v791_v11 }
 0x6c0   :  { %v793_v14 = vmul.f32 %v2175_v61, %v792_v12 }
 0x6c2   :  { %v797_v60 = vsel %vm796_vm2, %v2175_v61, %v793_v14 }
 0x6c3   :  { %v799_v63 = vmul.f32 %v797_v60, %v765_v43 }
 0x6c5   :  { %v802_v15 = vmul.f32 %v2119_v55, %v799_v63 }
 0x6c7   :  { %v805_v16 = vadd.f32 %v2120_v59, %v802_v15 }
 0x6c9   :  { %2008 = vmatmul.msk.f32.gmra.mxu2 %vm73_vm0, %v805_v16 }
 0x731   :  { %v835_v23 = vpop.f32.mrf.mxu2 }
 0x732   :  { %v2627_v24 = vadd.f32 %v2121_v0, %v835_v23 }
 0x734   :  { %v2633_v26 = vmul.f32 0.70710677, %v2627_v24  ;;  %v841_v32 = vmul.f32 0.5, %v2627_v24 }
 0x736   :  { %v845_v28 = vmul.f32 %v2633_v26, %v2633_v26 }
 0x738   :  { %v846_v30 = vmin.f32 %v845_v28, 16.0 }
 0x73a   :  { %v847_v33 = vmul.f32 2.1237322e-06, %v846_v30  ;;  %v858_v34 = vmul.f32 3.8918573e-05, %v846_v30 }
 0x73c   :  { %v848_v37 = vadd.f32 0.00028619796, %v847_v33  ;;  %v859_v38 = vadd.f32 0.001143296, %v858_v34 }
 0x73e   :  { %v849_v3 = vmul.f32 %v848_v37, %v846_v30  ;;  %v860_v40 = vmul.f32 %v859_v38, %v846_v30 }
 0x740   :  { %v850_v42 = vadd.f32 0.0036580483, %v849_v3  ;;  %v861_v43 = vadd.f32 0.014752088, %v860_v40 }
 0x742   :  { %v862_v62 = vmul.f32 %v861_v43, %v846_v30  ;;  %v851_v4 = vmul.f32 %v850_v42, %v846_v30 }
 0x744   :  { %v863_v44 = vadd.f32 0.112945676, %v862_v62  ;;  %v852_v49 = vadd.f32 0.05243302, %v851_v4 }
 0x746   :  { %v864_v47 = vmul.f32 %v863_v44, %v846_v30  ;;  %v853_v46 = vmul.f32 %v852_v49, %v846_v30 }
 0x748   :  { %v865_v50 = vadd.f32 0.4994258, %v864_v47  ;;  %v854_v56 = vadd.f32 0.18741608, %v853_v46 }
 0x74a   :  { %v866_v51 = vmul.f32 %v865_v50, %v846_v30  ;;  %v855_v6 = vmul.f32 %v854_v56, %v846_v30 }
 0x74c   :  { %v867_v52 = vadd.f32 1.0, %v866_v51  ;;  %v838_v53 = vpop.f32.mrf.mxu2  ;;  %v856_v11 = vadd.f32 1.1283791, %v855_v6 }
 0x74d   :  { %v2667_v54 = vadd.f32 %v2121_v0, %v838_v53  ;;  %v2122_v53 = vld [vmem:[%s3052_s23] ss:$0 sm:$0xff] }
 0x74e   :  { %2176 = vrcp.f32 %v867_v52  ;;  %v877_v12 = vand.u32 2147483647, %v867_v52  ;;  %v879_v14 = vand.u32 2147483648, %v867_v52  ;;  %vm873_vm4 = vweird.f32 %v867_v52 }
 0x74f   :  { %v844_v55 = vmul.f32 0.70710677, %v2667_v54  ;;  %v857_v0 = vmul.f32 %v856_v11, %v2633_v26  ;;  %v842_v51 = vmul.f32 0.5, %v2667_v54 }
 0x750   :  { %v880_v19 = vor.u32 1.1754944e-38, %v879_v14  ;;  %vm878_vm6 = vcmp.eq.f32.partialorder %v877_v12, 8.507059e+37 }
 0x751   :  { %v885_v57 = vmul.f32 %v844_v55, %v844_v55 }
 0x753   :  { %v886_v59 = vmin.f32 %v885_v57, 16.0 }
 0x754   :  { %v2177_v1 = vpop.eup %2176 }
 0x755   :  { %v869_v7 = vmul.f32 %v2177_v1, %v867_v52  ;;  %v887_v8 = vmul.f32 2.1237322e-06, %v886_v59  ;;  %v898_v58 = vmul.f32 3.8918573e-05, %v886_v59  ;;  %vm874_vm3 = vweird.f32 %v2177_v1 }
 0x756   :  { %vm875_vm5 = vmor %vm873_vm4, %vm874_vm3 }
 0x757   :  { %v870_v61 = vsub.f32 1.0, %v869_v7  ;;  %v888_v9 = vadd.f32 0.00028619796, %v887_v8  ;;  %v899_v10 = vadd.f32 0.001143296, %v898_v58 }
 0x759   :  { %v871_v60 = vmul.f32 %v2177_v1, %v870_v61  ;;  %v889_v63 = vmul.f32 %v888_v9, %v886_v59  ;;  %v900_v15 = vmul.f32 %v899_v10, %v886_v59 }
 0x75b   :  { %v872_v16 = vadd.f32 %v2177_v1, %v871_v60  ;;  %v901_v17 = vadd.f32 0.014752088, %v900_v15  ;;  %v890_v20 = vadd.f32 0.0036580483, %v889_v63  ;;  %v2014_v60 = vld [vmem:[%s3021_s4 + $0x38] sm:$0xff]  ;;  %v2013_v63 = vld [vmem:[%s3021_s4 + $0x30] sm:$0xff] }
 0x75c   :  { %1049 = vmatpush.msrb.mxu2 %v2014_v60  ;;  %v2012_v15 = vld [vmem:[%s3021_s4 + $0x28] sm:$0xff] }
 0x75d   :  { %v876_v21 = vsel %vm875_vm5, %v2177_v1, %v872_v16  ;;  %v902_v22 = vmul.f32 %v901_v17, %v886_v59  ;;  %v891_v28 = vmul.f32 %v890_v20, %v886_v59  ;;  %v2011_v16 = vld [vmem:[%s3021_s4 + $0x20] sm:$0xff] }
 0x75e   :  { %v881_v23 = vsel %vm878_vm6, %v880_v19, %v876_v21  ;;  %1050 = vmatpush.msrb.mxu2 %v2013_v63 }
 0x75f   :  { %v882_v25 = vmul.f32 %v881_v23, %v857_v0  ;;  %v903_v27 = vadd.f32 0.112945676, %v902_v22  ;;  %v892_v36 = vadd.f32 0.05243302, %v891_v28  ;;  %v2123_v28 = vld [vmem:[%s3051_s28 + $0x1] ss:$0 sm:$0xff] }
 0x760   :  { %1051 = vmatpush.msrb.mxu2 %v2012_v15 }
 0x761   :  { %v2009_v29 = vclamps-f32 %v882_v25, 1.0  ;;  %v904_v30 = vmul.f32 %v903_v27, %v886_v59  ;;  %v893_v3 = vmul.f32 %v892_v36, %v886_v59 }
 0x762   :  { %1052 = vmatpush.msrb.mxu2 %v2011_v16 }
 0x763   :  { %v925_v33 = vadd.f32 1.0, %v2009_v29  ;;  %v905_v34 = vadd.f32 0.4994258, %v904_v30  ;;  %v894_v26 = vadd.f32 0.18741608, %v893_v3 }
 0x765   :  { %v927_v37 = vmul.f32 %v925_v33, %v841_v32  ;;  %v906_v38 = vmul.f32 %v905_v34, %v886_v59  ;;  %v895_v41 = vmul.f32 %v894_v26, %v886_v59  ;;  %v2124_v32 = vld [vmem:[%s3020_s3 + $0x1] ss:$0 sm:$0xff] }
 0x767   :  { %963 = vmatmul.f32.vlgmr.msrb.gmra.mxu1 %v927_v37  ;;  %v907_v39 = vadd.f32 1.0, %v906_v38  ;;  %v896_v62 = vadd.f32 1.1283791, %v895_v41 }
 0x769   :  { %2178 = vrcp.f32 %v907_v39  ;;  %v919_v5 = vand.u32 2147483648, %v907_v39  ;;  %v917_v4 = vand.u32 2147483647, %v907_v39  ;;  %vm913_vm9 = vweird.f32 %v907_v39 }
 0x76a   :  { %v897_v45 = vmul.f32 %v896_v62, %v844_v55 }
 0x76b   :  { %v920_v44 = vor.u32 1.1754944e-38, %v919_v5  ;;  %vm918_vm13 = vcmp.eq.f32.partialorder %v917_v4, 8.507059e+37  ;;  %v2125_v4 = vld [vmem:[%s3022_s5 + $0x1] ss:$0 sm:$0xff]  ;;  %s3053_s5 = smov 8  }
 0x76f   :  { %v2179_v40 = vpop.eup %2178 }
 0x770   :  { %v909_v42 = vmul.f32 %v2179_v40, %v907_v39  ;;  %vm914_vm7 = vweird.f32 %v2179_v40 }
 0x771   :  { %vm915_vm12 = vmor %vm913_vm9, %vm914_vm7 }
 0x772   :  { %v910_v43 = vsub.f32 1.0, %v909_v42 }
 0x774   :  { %v911_v2 = vmul.f32 %v2179_v40, %v910_v43 }
 0x776   :  { %v912_v24 = vadd.f32 %v2179_v40, %v911_v2 }
 0x778   :  { %v916_v47 = vsel %vm915_vm12, %v2179_v40, %v912_v24 }
 0x779   :  { %v921_v48 = vsel %vm918_vm13, %v920_v44, %v916_v47 }
 0x77a   :  { %v922_v49 = vmul.f32 %v921_v48, %v897_v45 }
 0x77c   :  { %v2010_v50 = vclamps-f32 %v922_v49, 1.0 }
 0x77e   :  { %v926_v46 = vadd.f32 1.0, %v2010_v50 }
 0x780   :  { %v928_v52 = vmul.f32 %v926_v46, %v842_v51 }
 0x782   :  { %966 = vmatmul.f32.gmra.mxu1 %v928_v52 }
 0x7e4   :  { %v964_v56 = vpop.f32.mrf.mxu1 }
 0x7e5   :  { %v965_v57 = vadd.f32 %v2122_v53, %v964_v56 }
 0x7e7   :  { %v2677_v59 = vadd.f32 %v965_v57, %v2572_v31 }
 0x7e9   :  { %v974_v55 = vsel %vm73_vm0, %v2677_v59, 0.0 }
 0x7ea   :  { %975 = vadd.xlane.f32.xlu0 %v974_v55 }
 0x7ff   :  { %v967_v1 = vpop.f32.mrf.mxu1 }
 0x800   :  { %v968_v6 = vadd.f32 %v2122_v53, %v967_v1 }
 0x802   :  { %v2682_v54 = vadd.f32 %v968_v6, %v2577_v35 }
 0x804   :  { %v977_v7 = vsel %vm73_vm0, %v2682_v54, 0.0 }
 0x805   :  { %978 = vadd.xlane.f32.xlu1 %v977_v7 }
 0x85d   :  { %v976_v8 = vpop.xlane.xlu0 %975 }
 0x85e   :  { %v980_v58 = vmul.f32 %v976_v8, %v2378_v13 }
 0x860   :  { %v982_v61 = vsub.f32 %v2677_v59, %v980_v58 }
 0x862   :  { %v984_v31 = vmul.f32 %v982_v61, %v982_v61 }
 0x864   :  { %v986_v9 = vsel %vm73_vm0, %v984_v31, 0.0 }
 0x865   :  { %987 = vadd.xlane.f32.xlu2 %v986_v9 }
 0x878   :  { %v979_v10 = vpop.xlane.xlu1 %978 }
 0x879   :  { %v981_v11 = vmul.f32 %v979_v10, %v2378_v13 }
 0x87b   :  { %v983_v12 = vsub.f32 %v2682_v54, %v981_v11 }
 0x87d   :  { %v985_v35 = vmul.f32 %v983_v12, %v983_v12 }
 0x87f   :  { %v989_v14 = vsel %vm73_vm0, %v985_v35, 0.0 }
 0x880   :  { %990 = vadd.xlane.f32.xlu0 %v989_v14 }
 0x8d8   :  { %v988_v17 = vpop.xlane.xlu2 %987 }
 0x8d9   :  { %v992_v19 = vmul.f32 %v988_v17, %v2378_v13 }
 0x8db   :  { %v994_v20 = vadd.f32 1e-05, %v992_v19 }
 0x8dd   :  { %2180 = vrsqrt.f32 %v994_v20  ;;  %vm1002_vm15 = vweird.f32 %v994_v20 }
 0x8e3   :  { %v2181_v0 = vpop.eup %2180 }
 0x8e4   :  { %v997_v21 = vmul.f32 %v2181_v0, %v994_v20  ;;  %vm1003_vm14 = vweird.f32 %v2181_v0 }
 0x8e5   :  { %vm1004_vm1 = vmor %vm1002_vm15, %vm1003_vm14 }
 0x8e6   :  { %v998_v22 = vmul.f32 %v2181_v0, %v997_v21 }
 0x8e8   :  { %v999_v23 = vmul.f32 0.5, %v998_v22 }
 0x8ea   :  { %v1000_v25 = vsub.f32 1.5, %v999_v23 }
 0x8ec   :  { %v1001_v27 = vmul.f32 %v2181_v0, %v1000_v25 }
 0x8ee   :  { %v1005_v29 = vsel %vm1004_vm1, %v2181_v0, %v1001_v27 }
 0x8ef   :  { %v1016_v30 = vmul.f32 %v1005_v29, %v982_v61 }
 0x8f1   :  { %v1019_v33 = vmul.f32 %v2123_v28, %v1016_v30 }
 0x8f3   :  { %v991_v34 = vpop.xlane.xlu0 %990  ;;  %v1022_v36 = vadd.f32 %v2124_v32, %v1019_v33 }
 0x8f4   :  { %v993_v37 = vmul.f32 %v991_v34, %v2378_v13 }
 0x8f5   :  { %2015 = vmatmul.msk.f32.vlgmr.msrb.gmra.mxu2 %vm73_vm0, %v1022_v36 }
 0x8f6   :  { %v995_v38 = vadd.f32 1e-05, %v993_v37 }
 0x8f8   :  { %2182 = vrsqrt.f32 %v995_v38  ;;  %vm1012_vm3 = vweird.f32 %v995_v38 }
 0x8fe   :  { %v2183_v39 = vpop.eup %2182 }
 0x8ff   :  { %v1007_v3 = vmul.f32 %v2183_v39, %v995_v38  ;;  %vm1013_vm2 = vweird.f32 %v2183_v39 }
 0x900   :  { %vm1014_vm4 = vmor %vm1012_vm3, %vm1013_vm2 }
 0x901   :  { %v1008_v26 = vmul.f32 %v2183_v39, %v1007_v3 }
 0x903   :  { %v1009_v40 = vmul.f32 0.5, %v1008_v26 }
 0x905   :  { %v1010_v41 = vsub.f32 1.5, %v1009_v40 }
 0x907   :  { %v1011_v42 = vmul.f32 %v2183_v39, %v1010_v41 }
 0x909   :  { %v1015_v43 = vsel %vm1014_vm4, %v2183_v39, %v1011_v42 }
 0x90a   :  { %v1017_v5 = vmul.f32 %v1015_v43, %v983_v12 }
 0x90c   :  { %v1020_v62 = vmul.f32 %v2123_v28, %v1017_v5 }
 0x90e   :  { %v1023_v2 = vadd.f32 %v2124_v32, %v1020_v62 }
 0x910   :  { %2016 = vmatmul.msk.f32.gmra.mxu2 %vm73_vm0, %v1023_v2 }
 0x978   :  { %v1054_v24 = vpop.f32.mrf.mxu2 }
 0x979   :  { %v2717_v44 = vadd.f32 %v2125_v4, %v1054_v24 }
 0x97b   :  { %1066 = vrot.lane.b32.xlu0 %v2717_v44, %s2256_s13  ;;  %1062 = vrot.lane.b32.xlu1 %v2717_v44, %s2255_s1 }
 0x983   :  { %1070 = vrot.lane.b32.xlu1 %v2717_v44, %s2257_s20 }
 0x98b   :  { %1074 = vrot.lane.b32.xlu1 %v2717_v44, %s2258_s21 }
 0x993   :  { %v1057_v45 = vpop.f32.mrf.mxu2 }
 0x994   :  { %v2727_v47 = vadd.f32 %v2125_v4, %v1057_v45 }
 0x996   :  { %1064 = vrot.lane.b32.xlu2 %v2727_v47, %s2255_s1  ;;  %1068 = vrot.lane.b32.xlu0 %v2727_v47, %s2256_s13  ;;  %s3054_s1 = smov 24   ;;  %s3055_s13 = smov 16  }
 0x99e   :  { %1072 = vrot.lane.b32.xlu2 %v2727_v47, %s2257_s20  ;;  %1100 = vrot.lane.b32.xlu0 %v2727_v47, %s2258_s21 }
 0x9ed   :  { %v2737_v48 = vpop.permute.xlu0 %1066  ;;  %v2739_v49 = vpop.permute.xlu1 %1062 }
 0x9ee   :  { %1178 = vrot.lane.b32.xlu0 %v2737_v48, %s2258_s21  ;;  %1126 = vrot.lane.b32.xlu2 %v2739_v49, %s2258_s21  ;;  %v2100_v40 = vpack.i.bf16 %v2739_v49, %v2717_v44 }
 0x9f0   :  { %v2745_v50 = vpop.permute.xlu2 %1064 }
 0x9f1   :  { %1152 = vrot.lane.b32.xlu1 %v2745_v50, %s2258_s21 }
 0x9f5   :  { %v2749_v51 = vpop.permute.xlu1 %1070 }
 0x9f6   :  { %1230 = vrot.lane.b32.xlu2 %v2749_v51, %s2258_s21 }
 0x9f8   :  { %v2753_v46 = vpop.permute.xlu2 %1072 }
 0x9f9   :  { %1256 = vrot.lane.b32.xlu0 %v2753_v46, %s2258_s21 }
 0x9fd   :  { %v1075_v52 = vpop.permute.xlu1 %1074 }
 0x9fe   :  { %2017 = vmatpush.xpose.msk.msra.mxu3 %vm182_vm8, %v1075_v52 }
 0xa01   :  { %2018 = vmatmul.msk.f32.vlgmr.msra.gmra.mxu3 %vm182_vm8, %v2717_v44 }
 0xa08   :  { %v2760_v53 = vpop.permute.xlu0 %1068 }
 0xa09   :  { %1204 = vrot.lane.b32.xlu1 %v2760_v53, %s2258_s21  ;;  %s2264_s21 = smov [#allocation2]  }
 0xa10   :  { %v1101_v56 = vpop.permute.xlu0 %1100 }
 0xa11   :  { %2019 = vmatpush.xpose.msk.msrb.mxu0 %vm182_vm8, %v1101_v56 }
 0xa14   :  { %2020 = vmatmul.msk.f32.vlgmr.msrb.gmra.mxu0 %vm182_vm8, %v2727_v47 }
 0xa48   :  { %v1127_v57 = vpop.permute.xlu2 %1126 }
 0xa49   :  { %2021 = vmatpush.xpose.msk.msra.mxu2 %vm182_vm8, %v1127_v57 }
 0xa4c   :  { %2022 = vmatmul.msk.f32.vlgmr.msra.gmra.mxu2 %vm182_vm8, %v2739_v49  ;;  %v2110_v49 = vpack.i.bf16 %v2749_v51, %v2745_v50 }
 0xa50   :  { %v1231_v6 = vpop.permute.xlu2 %1230 }
 0xa60   :  { %v1179_v55 = vpop.permute.xlu0 %1178 }
 0xa61   :  { %2025 = vmatpush.xpose.msk.msra.mxu0 %vm182_vm8, %v1179_v55 }
 0xa63   :  { %v1153_v1 = vpop.permute.xlu1 %1152 }
 0xa64   :  { %2023 = vmatpush.xpose.msk.msrb.mxu3 %vm182_vm8, %v1153_v1  ;;  %2026 = vmatmul.msk.f32.vlgmr.msra.gmra.mxu0 %vm182_vm8, %v2737_v48 }
 0xa67   :  { %2024 = vmatmul.msk.f32.vlgmr.msrb.gmra.mxu3 %vm182_vm8, %v2745_v50 }
 0xa68   :  { %2029 = vmatpush.xpose.msk.msra.mxu3 %vm182_vm8, %v1231_v6 }
 0xa6b   :  { %v1257_v7 = vpop.permute.xlu0 %1256 }
 0xa6c   :  { %2031 = vmatpush.xpose.msk.msrb.mxu0 %vm182_vm8, %v1257_v7 }
 0xa6f   :  { %2030 = vmatmul.msk.f32.vlgmr.msra.gmra.mxu3 %vm182_vm8, %v2749_v51  ;;  %2032 = vmatmul.msk.f32.vlgmr.msrb.gmra.mxu0 %vm182_vm8, %v2753_v46 }
 0xa7b   :  { %v1205_v8 = vpop.permute.xlu1 %1204 }
 0xa7c   :  { %2027 = vmatpush.xpose.msk.msrb.mxu2 %vm182_vm8, %v1205_v8 }
 0xa7f   :  { %2028 = vmatmul.msk.f32.vlgmr.msrb.gmra.mxu2 %vm182_vm8, %v2760_v53 }
 0xa84   :  { %v1097_v58 = vpop.f32.mrf.mxu3 }
 0xa85   :  { %v1098_v61 = vadd.f32 %v1097_v58, %v2479_v18 }
 0xa87   :  { %v1282_v31 = vsel %vm182_vm8, %v1098_v61, -inf }
 0xa88   :  { %1283 = vmax.xlane.f32.xlu2 %v1282_v31 }
 0xa91   :  { %v1123_v9 = vpop.f32.mrf.mxu0 }
 0xa92   :  { %v1124_v10 = vadd.f32 %v1123_v9, %v2479_v18 }
 0xa94   :  { %v1285_v11 = vsel %vm182_vm8, %v1124_v10, -inf }
 0xa95   :  { %1286 = vmax.xlane.f32.xlu0 %v1285_v11 }
 0xacf   :  { %v1149_v12 = vpop.f32.mrf.mxu2 }
 0xad0   :  { %v1150_v35 = vadd.f32 %v1149_v12, %v2479_v18 }
 0xad2   :  { %v1288_v14 = vsel %vm182_vm8, %v1150_v35, -inf }
 0xad3   :  { %1289 = vmax.xlane.f32.xlu1 %v1288_v14 }
 0xae1   :  { %v1201_v60 = vpop.f32.mrf.mxu0 }
 0xae2   :  { %v1202_v63 = vadd.f32 %v1201_v60, %v2479_v18 }
 0xae4   :  { %v1294_v15 = vsel %vm182_vm8, %v1202_v63, -inf }
 0xae5   :  { %1295 = vmax.xlane.f32.xlu2 %v1294_v15 }
 0xaea   :  { %v1175_v20 = vpop.f32.mrf.mxu3 }
 0xaeb   :  { %v1176_v0 = vadd.f32 %v1175_v20, %v2479_v18 }
 0xaec   :  { %v1279_v16 = vpop.f32.mrf.mxu0 }
 0xaed   :  { %v2794_v17 = vadd.f32 %v1279_v16, %v2479_v18  ;;  %v1291_v21 = vsel %vm182_vm8, %v1176_v0, -inf }
 0xaef   :  { %v1303_v19 = vsel %vm182_vm8, %v2794_v17, -inf }
 0xaf0   :  { %1304 = vmax.xlane.f32.xlu1 %v1303_v19  ;;  %v2105_v19 = vpack.i.bf16 %v2737_v48, %v2727_v47 }
 0xaf2   :  { %v1253_v33 = vpop.f32.mrf.mxu3 }
 0xaf3   :  { %v1254_v37 = vadd.f32 %v1253_v33, %v2479_v18 }
 0xaf5   :  { %v1300_v39 = vsel %vm182_vm8, %v1254_v37, -inf }
 0xaf8   :  { %1292 = vmax.xlane.f32.xlu1 %v1291_v21 }
 0xafb   :  { %v1284_v22 = vpop.xlane.xlu2 %1283 }
 0xafc   :  { %v1306_v23 = vsub.f32 %v1098_v61, %v1284_v22 }
 0xafe   :  { %v1314_v25 = vmul.f32 1.442695, %v1306_v23 }
 0xb00   :  { %2184 = vpow2.f32 %v1314_v25 }
 0xb02   :  { %v1227_v27 = vpop.f32.mrf.mxu2 }
 0xb03   :  { %v1228_v28 = vadd.f32 %v1227_v27, %v2479_v18 }
 0xb05   :  { %v1297_v29 = vsel %vm182_vm8, %v1228_v28, -inf }
 0xb06   :  { %v2185_v30 = vpop.eup %2184  ;;  %1298 = vmax.xlane.f32.xlu2 %v1297_v29 }
 0xb07   :  { %v1330_v32 = vsel %vm182_vm8, %v2185_v30, 0.0 }
 0xb08   :  { %v1287_v34 = vpop.xlane.xlu0 %1286  ;;  %1331 = vadd.xlane.f32.xlu0 %v1330_v32 }
 0xb09   :  { %v1307_v36 = vsub.f32 %v1124_v10, %v1287_v34 }
 0xb0b   :  { %v1316_v38 = vmul.f32 1.442695, %v1307_v36 }
 0xb0d   :  { %2186 = vpow2.f32 %v1316_v38 }
 0xb10   :  { %1301 = vmax.xlane.f32.xlu0 %v1300_v39 }
 0xb13   :  { %v2805_v3 = vpop.eup %2186 }
 0xb14   :  { %v1333_v26 = vsel %vm182_vm8, %v2805_v3, 0.0 }
 0xb15   :  { %1334 = vadd.xlane.f32.xlu1 %v1333_v26 }
 0xb1e   :  { %2101 = vrot.lane.b32.xlu2 %v2100_v40, %s2260_s22 }
 0xb46   :  { %v1290_v41 = vpop.xlane.xlu1 %1289 }
 0xb47   :  { %v1308_v42 = vsub.f32 %v1150_v35, %v1290_v41 }
 0xb49   :  { %v1318_v43 = vmul.f32 1.442695, %v1308_v42 }
 0xb4b   :  { %2188 = vpow2.f32 %v1318_v43 }
 0xb51   :  { %v2189_v18 = vpop.eup %2188 }
 0xb52   :  { %v1336_v5 = vsel %vm182_vm8, %v2189_v18, 0.0 }
 0xb53   :  { %1337 = vadd.xlane.f32.xlu2 %v1336_v5 }
 0xb58   :  { %v1296_v62 = vpop.xlane.xlu2 %1295 }
 0xb59   :  { %v1310_v2 = vsub.f32 %v1202_v63, %v1296_v62 }
 0xb5b   :  { %v1322_v4 = vmul.f32 1.442695, %v1310_v2 }
 0xb5d   :  { %2190 = vpow2.f32 %v1322_v4 }
 0xb63   :  { %v2813_v24 = vpop.eup %2190  ;;  %v1305_v45 = vpop.xlane.xlu1 %1304 }
 0xb64   :  { %v1342_v44 = vsel %vm182_vm8, %v2813_v24, 0.0  ;;  %v1313_v58 = vsub.f32 %v2794_v17, %v1305_v45 }
 0xb65   :  { %1343 = vadd.xlane.f32.xlu0 %v1342_v44 }
 0xb66   :  { %v1328_v50 = vmul.f32 1.442695, %v1313_v58 }
 0xb6b   :  { %2111 = vrot.lane.b32.xlu2 %v2110_v49, %s2260_s22  ;;  %v1293_v52 = vpop.xlane.xlu1 %1292 }
 0xb6c   :  { %v1309_v56 = vsub.f32 %v1176_v0, %v1293_v52 }
 0xb6e   :  { %v1320_v57 = vmul.f32 1.442695, %v1309_v56  ;;  %v2044_v56 = vld [vmem:[%s3023_s6 + $0x38] sm:$0xff] }
 0xb70   :  { %2192 = vpow2.f32 %v1320_v57 }
 0xb73   :  { %1552 = vrot.lane.b32.xlu2 %v2753_v46, %s2260_s22 }
 0xb76   :  { %v2193_v55 = vpop.eup %2192 }
 0xb77   :  { %v1339_v1 = vsel %vm182_vm8, %v2193_v55, 0.0 }
 0xb78   :  { %1340 = vadd.xlane.f32.xlu1 %v1339_v1  ;;  %v2042_v1 = vld [vmem:[%s3023_s6 + $0x28] sm:$0xff] }
 0xb79   :  { %v1299_v6 = vpop.xlane.xlu2 %1298 }
 0xb7a   :  { %v1311_v7 = vsub.f32 %v1228_v28, %v1299_v6  ;;  %v2041_v6 = vld [vmem:[%s3023_s6 + $0x20] sm:$0xff] }
 0xb7b   :  { %v1332_v8 = vpop.xlane.xlu0 %1331 }
 0xb7c   :  { %v1324_v61 = vmul.f32 1.442695, %v1311_v7  ;;  %2194 = vrcp.f32 %v1332_v8 }
 0xb7e   :  { %2196 = vpow2.f32 %v1324_v61 }
 0xb7f   :  { %2198 = vpow2.f32 %v1328_v50 }
 0xb81   :  { %v2102_v51 = vpop.permute.xlu2 %2101 }
 0xb82   :  { %v2195_v31 = vpop.eup %2194  ;;  %v2104_v9 = vunpack.i.h.bf16 %v2102_v51  ;;  %v2103_v10 = vunpack.i.l.bf16 %v2102_v51 }
 0xb83   :  { %v1362_v11 = vmul.f32 %v2195_v31, %v2185_v30  ;;  %v1302_v12 = vpop.xlane.xlu0 %1301 }
 0xb84   :  { %v2824_v46 = vpop.eup %2196  ;;  %v1312_v35 = vsub.f32 %v1254_v37, %v1302_v12  ;;  %1391 = vmatpush.msra.mxu2 %v2103_v10  ;;  %1443 = vmatpush.msra.mxu0 %v2104_v9 }
 0xb85   :  { %2033 = vmatmul.msk.f32.vlgmr.msra.gmra.mxu2 %vm182_vm8, %v1362_v11  ;;  %v1345_v14 = vsel %vm182_vm8, %v2824_v46, 0.0  ;;  %v2199_v63 = vpop.eup %2198 }
 0xb86   :  { %v1326_v60 = vmul.f32 1.442695, %v1312_v35  ;;  %1346 = vadd.xlane.f32.xlu1 %v1345_v14  ;;  %v1351_v15 = vsel %vm182_vm8, %v2199_v63, 0.0  ;;  %v2126_v35 = vld [vmem:[%s3024_s7 + $0x1] ss:$0 sm:$0xff] }
 0xb88   :  { %2200 = vpow2.f32 %v1326_v60  ;;  %v1335_v28 = vpop.xlane.xlu1 %1334 }
 0xb8e   :  { %v2201_v16 = vpop.eup %2200  ;;  %1352 = vadd.xlane.f32.xlu1 %v1351_v15 }
 0xb8f   :  { %v1348_v17 = vsel %vm182_vm8, %v2201_v16, 0.0 }
 0xb90   :  { %1349 = vadd.xlane.f32.xlu0 %v1348_v17 }
 0xba4   :  { %2106 = vrot.lane.b32.xlu0 %v2105_v19, %s2260_s22 }
 0xba7   :  { %1500 = vrot.lane.b32.xlu1 %v2760_v53, %s2260_s22 }
 0xbc6   :  { %v1338_v20 = vpop.xlane.xlu2 %1337 }
 0xbc7   :  { %2202 = vrcp.f32 %v1338_v20 }
 0xbcd   :  { %v2203_v0 = vpop.eup %2202 }
 0xbce   :  { %v1364_v21 = vmul.f32 %v2203_v0, %v2189_v18  ;;  %v2112_v22 = vpop.permute.xlu2 %2111 }
 0xbcf   :  { %v2114_v23 = vunpack.i.h.bf16 %v2112_v22  ;;  %v2113_v25 = vunpack.i.l.bf16 %v2112_v22 }
 0xbd0   :  { %2035 = vmatmul.msk.f32.vlgmr.msra.gmra.mxu0 %vm182_vm8, %v1364_v21 }
 0xbd1   :  { %1469 = vmatpush.msra.mxu1 %v2113_v25  ;;  %1547 = vmatpush.msrb.mxu0 %v2114_v23 }
 0xbd6   :  { %v1553_v27 = vpop.permute.xlu2 %1552 }
 0xbd7   :  { %1573 = vmatpush.msrb.mxu1 %v1553_v27 }
 0xbd8   :  { %v1344_v30 = vpop.xlane.xlu0 %1343 }
 0xbeb   :  { %v1341_v47 = vpop.xlane.xlu1 %1340 }
 0xbec   :  { %2204 = vrcp.f32 %v1341_v47 }
 0xbf2   :  { %v2205_v48 = vpop.eup %2204 }
 0xbf3   :  { %v1365_v29 = vmul.f32 %v2205_v48, %v2193_v55  ;;  %v2043_v55 = vld [vmem:[%s3023_s6 + $0x30] sm:$0xff]  ;;  %v2050_v48 = vld [vmem:[%s3027_s10 + $0x38] sm:$0xff] }
 0xbf5   :  { %2036 = vmatmul.msk.f32.vlgmr.msra.gmra.mxu1 %vm182_vm8, %v1365_v29  ;;  %v2049_v29 = vld [vmem:[%s3027_s10 + $0x30] sm:$0xff] }
 0xbf9   :  { %v1347_v53 = vpop.xlane.xlu1 %1346 }
 0xc01   :  { %v1353_v32 = vpop.xlane.xlu1 %1352 }
 0xc02   :  { %2206 = vrcp.f32 %v1353_v32 }
 0xc03   :  { %v1350_v33 = vpop.xlane.xlu0 %1349 }
 0xc04   :  { %2208 = vrcp.f32 %v1350_v33 }
 0xc05   :  { %2210 = vrcp.f32 %v1335_v28 }
 0xc06   :  { %2212 = vrcp.f32 %v1344_v30  ;;  %v2047_v30 = vld [vmem:[%s3027_s10 + $0x20] sm:$0xff] }
 0xc07   :  { %2214 = vrcp.f32 %v1347_v53  ;;  %v2048_v53 = vld [vmem:[%s3027_s10 + $0x28] sm:$0xff] }
 0xc08   :  { %v2207_v34 = vpop.eup %2206  ;;  %v1393_v44 = vpop.f32.mrf.mxu2 }
 0xc09   :  { %v1369_v36 = vmul.f32 %v2207_v34, %v2199_v63 }
 0xc0a   :  { %v2209_v37 = vpop.eup %2208 }
 0xc0b   :  { %v1368_v38 = vmul.f32 %v2209_v37, %v2201_v16  ;;  %2040 = vmatmul.msk.f32.vlgmr.msrb.gmra.mxu1 %vm182_vm8, %v1369_v36  ;;  %v2211_v39 = vpop.eup %2210 }
 0xc0c   :  { %v2213_v26 = vpop.eup %2212  ;;  %v1363_v43 = vmul.f32 %v2211_v39, %v2805_v3 }
 0xc0d   :  { %2039 = vmatmul.msk.f32.vlgmr.msrb.gmra.mxu0 %vm182_vm8, %v1368_v38  ;;  %v1366_v18 = vmul.f32 %v2213_v26, %v2813_v24  ;;  %v2215_v62 = vpop.eup %2214 }
 0xc0e   :  { %v1367_v2 = vmul.f32 %v2215_v62, %v2824_v46 }
 0xc16   :  { %v2107_v40 = vpop.permute.xlu0 %2106 }
 0xc17   :  { %v2109_v41 = vunpack.i.h.bf16 %v2107_v40  ;;  %v2108_v42 = vunpack.i.l.bf16 %v2107_v40 }
 0xc19   :  { %1417 = vmatpush.msrb.mxu3 %v2108_v42  ;;  %1495 = vmatpush.msrb.mxu2 %v2109_v41  ;;  %v1501_v5 = vpop.permute.xlu1 %1500  ;;  %v2127_v41 = vld [vmem:[%s3025_s8 + $0x1] ss:$0 sm:$0xff]  ;;  %s1965_s8 = sshll.u32 %s2264_s21, 4  ;;  %s1966_s8 = int_to_ptr.vmem [resolvable:$true] %s1965_s8 }
 0xc1a   :  { %2034 = vmatmul.msk.f32.vlgmr.msrb.gmra.mxu3 %vm182_vm8, %v1363_v43  ;;  %2037 = vmatmul.msk.f32.vlgmr.msrb.gmra.mxu2 %vm182_vm8, %v1366_v18  ;;  %v2128_v18 = vld [vmem:[%s3026_s9 + $0x1] ss:$0 sm:$0xff] }
 0xc1b   :  { %1521 = vmatpush.msra.mxu3 %v1501_v5  ;;  %1633 = vmatpush.msra.mxu2 %v2044_v56 }
 0xc1d   :  { %1634 = vmatpush.msra.mxu2 %v2043_v55  ;;  %1723 = vmatpush.msrb.mxu3 %v2050_v48 }
 0xc1f   :  { %1635 = vmatpush.msra.mxu2 %v2042_v1  ;;  %1724 = vmatpush.msrb.mxu3 %v2049_v29 }
 0xc21   :  { %1636 = vmatpush.msra.mxu2 %v2041_v6  ;;  %1725 = vmatpush.msrb.mxu3 %v2048_v53  ;;  %v2056_v53 = vld [vmem:[%s3029_s12 + $0x88] sm:$0xff] }
 0xc22   :  { %2038 = vmatmul.msk.f32.vlgmr.msra.gmra.mxu3 %vm182_vm8, %v1367_v2 }
 0xc23   :  { %1726 = vmatpush.msrb.mxu3 %v2047_v30 }
 0xc4d   :  { %v1445_v4 = vpop.f32.mrf.mxu0 }
 0xc4e   :  { %1580 = vrot.lane.b32.xlu0 %v1445_v4, %s3053_s5 }
 0xc72   :  { %v1471_v45 = vpop.f32.mrf.mxu1 }
 0xc88   :  { %v1575_v3 = vpop.f32.mrf.mxu1 }
 0xc89   :  { %1598 = vrot.lane.b32.xlu1 %v1575_v3, %s3054_s1 }
 0xc8a   :  { %v1549_v24 = vpop.f32.mrf.mxu0 }
 0xc8b   :  { %1596 = vrot.lane.b32.xlu0 %v1549_v24, %s3054_s1 }
 0xc9d   :  { %v1419_v49 = vpop.f32.mrf.mxu3  ;;  %v1497_v52 = vpop.f32.mrf.mxu2 }
 0xc9e   :  { %1588 = vrot.lane.b32.xlu2 %v1497_v52, %s3055_s13 }
 0xca5   :  { %v1523_v57 = vpop.f32.mrf.mxu3 }
 0xca6   :  { %1582 = vrot.lane.b32.xlu2 %v1471_v45, %s3053_s5  ;;  %1590 = vrot.lane.b32.xlu0 %v1523_v57, %s3055_s13 }
 0xcc0   :  { %v1581_v7 = vpop.permute.xlu0 %1580 }
 0xcc1   :  { %v1602_v58 = vsel %vm182_vm8, %v1393_v44, %v1581_v7  ;;  %v2070_v7 = vld [vmem:[%s3029_s12 + $0xf8] sm:$0xff] }
 0xcc2   :  { %1841 = vmatpush.msra.mxu0 %v2070_v7 }
 0xcf8   :  { %v1589_v8 = vpop.permute.xlu2 %1588 }
 0xcf9   :  { %v1604_v61 = vsel %vm711_vm10, %v1602_v58, %v1589_v8  ;;  %v2069_v8 = vld [vmem:[%s3029_s12 + $0xf0] sm:$0xff]  ;;  %v2068_v58 = vld [vmem:[%s3029_s12 + $0xe8] sm:$0xff] }
 0xcfa   :  { %1842 = vmatpush.msra.mxu0 %v2069_v8 }
 0xcfb   :  { %v1599_v11 = vpop.permute.xlu1 %1598 }
 0xcfc   :  { %1843 = vmatpush.msra.mxu0 %v2068_v58 }
 0xcfd   :  { %v1597_v50 = vpop.permute.xlu0 %1596 }
 0xcfe   :  { %v1606_v51 = vsel %vm714_vm11, %v1604_v61, %v1597_v50  ;;  %v2129_v61 = vld [vmem:[%s3028_s11 + $0x1] ss:$0 sm:$0xff] }
 0xcff   :  { %2045 = vmatmul.msk.f32.vlgmr.msra.gmra.mxu2 %vm73_vm0, %v1606_v51  ;;  %v2067_v50 = vld [vmem:[%s3029_s12 + $0xe0] sm:$0xff]  ;;  %v2066_v51 = vld [vmem:[%s3029_s12 + $0xd8] sm:$0xff] }
 0xd00   :  { %v1583_v31 = vpop.permute.xlu2 %1582  ;;  %1844 = vmatpush.msra.mxu0 %v2067_v50 }
 0xd01   :  { %v1603_v9 = vsel %vm182_vm8, %v1419_v49, %v1583_v31 }
 0xd02   :  { %1845 = vmatpush.msra.mxu0 %v2066_v51 }
 0xd18   :  { %v1591_v10 = vpop.permute.xlu0 %1590 }
 0xd19   :  { %v1605_v12 = vsel %vm711_vm10, %v1603_v9, %v1591_v10  ;;  %v2065_v10 = vld [vmem:[%s3029_s12 + $0xd0] sm:$0xff] }
 0xd1a   :  { %v1607_v46 = vsel %vm714_vm11, %v1605_v12, %v1599_v11  ;;  %1846 = vmatpush.msra.mxu0 %v2065_v10  ;;  %v2064_v12 = vld [vmem:[%s3029_s12 + $0xc8] sm:$0xff] }
 0xd1b   :  { %2046 = vmatmul.msk.f32.gmra.mxu2 %vm73_vm0, %v1607_v46 }
 0xd1c   :  { %1847 = vmatpush.msra.mxu0 %v2064_v12 }
 0xd82   :  { %v1638_v14 = vpop.f32.mrf.mxu2 }
 0xd83   :  { %v1639_v60 = vadd.f32 %v2126_v35, %v1638_v14 }
 0xd85   :  { %v2876_v63 = vadd.f32 %v1639_v60, %v2677_v59  ;;  %v2062_v60 = vld [vmem:[%s3029_s12 + $0xb8] sm:$0xff] }
 0xd87   :  { %v1648_v15 = vsel %vm73_vm0, %v2876_v63, 0.0 }
 0xd88   :  { %1649 = vadd.xlane.f32.xlu2 %v1648_v15 }
 0xd9e   :  { %v1641_v16 = vpop.f32.mrf.mxu2 }
 0xd9f   :  { %v1642_v17 = vadd.f32 %v2126_v35, %v1641_v16  ;;  %v2063_v35 = vld [vmem:[%s3029_s12 + $0xc0] sm:$0xff] }
 0xda0   :  { %1848 = vmatpush.msra.mxu0 %v2063_v35 }
 0xda1   :  { %v2881_v19 = vadd.f32 %v1642_v17, %v2682_v54  ;;  %v2061_v17 = vld [vmem:[%s3029_s12 + $0xb0] sm:$0xff] }
 0xda2   :  { %1849 = vmatpush.msra.mxu0 %v2062_v60 }
 0xda3   :  { %v1651_v20 = vsel %vm73_vm0, %v2881_v19, 0.0 }
 0xda4   :  { %1652 = vadd.xlane.f32.xlu0 %v1651_v20  ;;  %1850 = vmatpush.msra.mxu0 %v2061_v17 }
 0xdfb   :  { %v1650_v0 = vpop.xlane.xlu2 %1649 }
 0xdfc   :  { %v1654_v21 = vmul.f32 %v1650_v0, %v2378_v13 }
 0xdfe   :  { %v1656_v22 = vsub.f32 %v2876_v63, %v1654_v21  ;;  %v2060_v21 = vld [vmem:[%s3029_s12 + $0xa8] sm:$0xff] }
 0xdff   :  { %1851 = vmatpush.msra.mxu0 %v2060_v21 }
 0xe00   :  { %v1658_v59 = vmul.f32 %v1656_v22, %v1656_v22 }
 0xe02   :  { %v1660_v23 = vsel %vm73_vm0, %v1658_v59, 0.0 }
 0xe03   :  { %1661 = vadd.xlane.f32.xlu1 %v1660_v23  ;;  %v2059_v23 = vld [vmem:[%s3029_s12 + $0xa0] sm:$0xff] }
 0xe04   :  { %1852 = vmatpush.msra.mxu0 %v2059_v23 }
 0xe17   :  { %v1653_v25 = vpop.xlane.xlu0 %1652 }
 0xe18   :  { %v1655_v27 = vmul.f32 %v1653_v25, %v2378_v13 }
 0xe1a   :  { %v1657_v28 = vsub.f32 %v2881_v19, %v1655_v27 }
 0xe1c   :  { %v1659_v54 = vmul.f32 %v1657_v28, %v1657_v28 }
 0xe1e   :  { %v1663_v47 = vsel %vm73_vm0, %v1659_v54, 0.0 }
 0xe1f   :  { %1664 = vadd.xlane.f32.xlu2 %v1663_v47  ;;  %v2057_v47 = vld [vmem:[%s3029_s12 + $0x90] sm:$0xff] }
 0xe76   :  { %v1662_v32 = vpop.xlane.xlu1 %1661 }
 0xe77   :  { %v1666_v33 = vmul.f32 %v1662_v32, %v2378_v13  ;;  %v2055_v32 = vld [vmem:[%s3029_s12 + $0x80] sm:$0xff] }
 0xe79   :  { %v1668_v34 = vadd.f32 1e-05, %v1666_v33 }
 0xe7b   :  { %2216 = vrsqrt.f32 %v1668_v34  ;;  %vm1676_vm10 = vweird.f32 %v1668_v34 }
 0xe81   :  { %v2217_v36 = vpop.eup %2216 }
 0xe82   :  { %v1671_v37 = vmul.f32 %v2217_v36, %v1668_v34  ;;  %vm1677_vm8 = vweird.f32 %v2217_v36 }
 0xe83   :  { %vm1678_vm11 = vmor %vm1676_vm10, %vm1677_vm8 }
 0xe84   :  { %v1672_v38 = vmul.f32 %v2217_v36, %v1671_v37 }
 0xe86   :  { %v1673_v39 = vmul.f32 0.5, %v1672_v38 }
 0xe88   :  { %v1674_v26 = vsub.f32 1.5, %v1673_v39 }
 0xe8a   :  { %v1675_v40 = vmul.f32 %v2217_v36, %v1674_v26 }
 0xe8c   :  { %v1679_v42 = vsel %vm1678_vm11, %v2217_v36, %v1675_v40 }
 0xe8d   :  { %v1690_v43 = vmul.f32 %v1679_v42, %v1656_v22 }
 0xe8f   :  { %v1693_v5 = vmul.f32 %v2127_v41, %v1690_v43 }
 0xe91   :  { %v1696_v62 = vadd.f32 %v2128_v18, %v1693_v5 }
 0xe92   :  { %v1665_v2 = vpop.xlane.xlu2 %1664 }
 0xe93   :  { %v1667_v4 = vmul.f32 %v1665_v2, %v2378_v13  ;;  %2051 = vmatmul.msk.f32.vlgmr.msrb.gmra.mxu3 %vm73_vm0, %v1696_v62 }
 0xe95   :  { %v1669_v45 = vadd.f32 1e-05, %v1667_v4 }
 0xe97   :  { %2218 = vrsqrt.f32 %v1669_v45  ;;  %vm1686_vm6 = vweird.f32 %v1669_v45 }
 0xe9d   :  { %v2219_v3 = vpop.eup %2218 }
 0xe9e   :  { %v1681_v24 = vmul.f32 %v2219_v3, %v1669_v45  ;;  %vm1687_vm5 = vweird.f32 %v2219_v3 }
 0xe9f   :  { %vm1688_vm7 = vmor %vm1686_vm6, %vm1687_vm5 }
 0xea0   :  { %v1682_v44 = vmul.f32 %v2219_v3, %v1681_v24 }
 0xea2   :  { %v1683_v49 = vmul.f32 0.5, %v1682_v44 }
 0xea4   :  { %v1684_v52 = vsub.f32 1.5, %v1683_v49 }
 0xea6   :  { %v1685_v56 = vmul.f32 %v2219_v3, %v1684_v52 }
 0xea8   :  { %v1689_v57 = vsel %vm1688_vm7, %v2219_v3, %v1685_v56 }
 0xea9   :  { %v1691_v55 = vmul.f32 %v1689_v57, %v1657_v28  ;;  %v2058_v28 = vld [vmem:[%s3029_s12 + $0x98] sm:$0xff] }
 0xeaa   :  { %1853 = vmatpush.msra.mxu0 %v2058_v28 }
 0xeab   :  { %v1694_v1 = vmul.f32 %v2127_v41, %v1691_v55 }
 0xeac   :  { %1854 = vmatpush.msra.mxu0 %v2057_v47 }
 0xead   :  { %v1697_v6 = vadd.f32 %v2128_v18, %v1694_v1 }
 0xeae   :  { %1855 = vmatpush.msra.mxu0 %v2056_v53 }
 0xeaf   :  { %2052 = vmatmul.msk.f32.gmra.mxu3 %vm73_vm0, %v1697_v6 }
 0xeb0   :  { %1856 = vmatpush.msra.mxu0 %v2055_v32 }
 0xf16   :  { %v1728_v31 = vpop.f32.mrf.mxu3 }
 0xf17   :  { %v2931_v9 = vadd.f32 %v2129_v61, %v1728_v31 }
 0xf19   :  { %v2937_v11 = vmul.f32 0.70710677, %v2931_v9  ;;  %v1734_v35 = vmul.f32 0.5, %v2931_v9 }
 0xf1b   :  { %v1738_v46 = vmul.f32 %v2937_v11, %v2937_v11 }
 0xf1d   :  { %v1739_v14 = vmin.f32 %v1738_v46, 16.0 }
 0xf1f   :  { %v1740_v15 = vmul.f32 2.1237322e-06, %v1739_v14  ;;  %v1751_v16 = vmul.f32 3.8918573e-05, %v1739_v14 }
 0xf21   :  { %v1741_v20 = vadd.f32 0.00028619796, %v1740_v15  ;;  %v1752_v0 = vadd.f32 0.001143296, %v1751_v16 }
 0xf23   :  { %v1742_v22 = vmul.f32 %v1741_v20, %v1739_v14  ;;  %v1753_v59 = vmul.f32 %v1752_v0, %v1739_v14 }
 0xf25   :  { %v1743_v25 = vadd.f32 0.0036580483, %v1742_v22  ;;  %v1754_v27 = vadd.f32 0.014752088, %v1753_v59 }
 0xf27   :  { %v1755_v54 = vmul.f32 %v1754_v27, %v1739_v14  ;;  %v1744_v48 = vmul.f32 %v1743_v25, %v1739_v14 }
 0xf29   :  { %v1756_v29 = vadd.f32 0.112945676, %v1755_v54  ;;  %v1745_v33 = vadd.f32 0.05243302, %v1744_v48 }
 0xf2b   :  { %v1757_v30 = vmul.f32 %v1756_v29, %v1739_v14  ;;  %v1746_v37 = vmul.f32 %v1745_v33, %v1739_v14 }
 0xf2d   :  { %v1758_v34 = vadd.f32 0.4994258, %v1757_v30  ;;  %v1747_v40 = vadd.f32 0.18741608, %v1746_v37 }
 0xf2f   :  { %v1759_v36 = vmul.f32 %v1758_v34, %v1739_v14  ;;  %v1748_v18 = vmul.f32 %v1747_v40, %v1739_v14 }
 0xf31   :  { %v1760_v38 = vadd.f32 1.0, %v1759_v36  ;;  %v1749_v3 = vadd.f32 1.1283791, %v1748_v18 }
 0xf32   :  { %v1731_v39 = vpop.f32.mrf.mxu3 }
 0xf33   :  { %2220 = vrcp.f32 %v1760_v38  ;;  %v2971_v26 = vadd.f32 %v2129_v61, %v1731_v39  ;;  %v1770_v24 = vand.u32 2147483647, %v1760_v38  ;;  %v1772_v44 = vand.u32 2147483648, %v1760_v38 }
 0xf34   :  { %vm1766_vm12 = vweird.f32 %v1760_v38  ;;  %v1750_v7 = vmul.f32 %v1749_v3, %v2937_v11 }
 0xf35   :  { %v1737_v41 = vmul.f32 0.70710677, %v2971_v26  ;;  %v1773_v6 = vor.u32 1.1754944e-38, %v1772_v44  ;;  %vm1771_vm14 = vcmp.eq.f32.partialorder %v1770_v24, 8.507059e+37  ;;  %v1735_v34 = vmul.f32 0.5, %v2971_v26 }
 0xf37   :  { %v1778_v42 = vmul.f32 %v1737_v41, %v1737_v41 }
 0xf39   :  { %v2221_v43 = vpop.eup %2220  ;;  %v1779_v62 = vmin.f32 %v1778_v42, 16.0 }
 0xf3a   :  { %v1762_v5 = vmul.f32 %v2221_v43, %v1760_v38  ;;  %vm1767_vm9 = vweird.f32 %v2221_v43  ;;  %v2130_v38 = vld [vmem:[%s3052_s23 + $0x1] ss:$0 sm:$0xff] }
 0xf3b   :  { %v1780_v4 = vmul.f32 2.1237322e-06, %v1779_v62  ;;  %v1791_v45 = vmul.f32 3.8918573e-05, %v1779_v62  ;;  %vm1768_vm13 = vmor %vm1766_vm12, %vm1767_vm9 }
 0xf3c   :  { %v1763_v2 = vsub.f32 1.0, %v1762_v5 }
 0xf3d   :  { %v1781_v52 = vadd.f32 0.00028619796, %v1780_v4  ;;  %v1792_v56 = vadd.f32 0.001143296, %v1791_v45 }
 0xf3e   :  { %v1764_v49 = vmul.f32 %v2221_v43, %v1763_v2 }
 0xf3f   :  { %v1782_v55 = vmul.f32 %v1781_v52, %v1779_v62  ;;  %v1793_v1 = vmul.f32 %v1792_v56, %v1779_v62  ;;  %v1924_v56 = vld [vmem:[%s3033_s16 + $0x10] sm:$0xff] }
 0xf40   :  { %v1765_v57 = vadd.f32 %v2221_v43, %v1764_v49 }
 0xf41   :  { %v1794_v58 = vadd.f32 0.014752088, %v1793_v1  ;;  %v1783_v50 = vadd.f32 0.0036580483, %v1782_v55  ;;  %v1922_v55 = vld [vmem:[%s3033_s16] sm:$0xff] }
 0xf42   :  { %v1769_v8 = vsel %vm1768_vm13, %v2221_v43, %v1765_v57  ;;  %v1923_v57 = vld [vmem:[%s3033_s16 + $0x8] sm:$0xff] }
 0xf43   :  { %v1774_v61 = vsel %vm1771_vm14, %v1773_v6, %v1769_v8  ;;  %v1795_v31 = vmul.f32 %v1794_v58, %v1779_v62  ;;  %v1784_v46 = vmul.f32 %v1783_v50, %v1779_v62 }
 0xf44   :  { %v1775_v51 = vmul.f32 %v1774_v61, %v1750_v7 }
 0xf45   :  { %v1796_v12 = vadd.f32 0.112945676, %v1795_v31  ;;  %v1785_v17 = vadd.f32 0.05243302, %v1784_v46 }
 0xf46   :  { %v2053_v10 = vclamps-f32 %v1775_v51, 1.0 }
 0xf47   :  { %v1797_v60 = vmul.f32 %v1796_v12, %v1779_v62  ;;  %v1786_v0 = vmul.f32 %v1785_v17, %v1779_v62 }
 0xf48   :  { %v1818_v14 = vadd.f32 1.0, %v2053_v10  ;;  %v2131_v10 = vld [vmem:[%s3031_s14] ss:$0 sm:$0xff] }
 0xf49   :  { %v1798_v16 = vadd.f32 0.4994258, %v1797_v60  ;;  %v1787_v21 = vadd.f32 0.18741608, %v1786_v0 }
 0xf4a   :  { %v1820_v15 = vmul.f32 %v1818_v14, %v1734_v35  ;;  %v2132_v35 = vld [vmem:[%s3032_s15] ss:$0 sm:$0xff] }
 0xf4b   :  { %v1799_v20 = vmul.f32 %v1798_v16, %v1779_v62  ;;  %v1788_v59 = vmul.f32 %v1787_v21, %v1779_v62 }
 0xf4c   :  { %1857 = vmatmul.f32.vlgmr.msra.gmra.mxu0 %v1820_v15 }
 0xf4d   :  { %v1800_v11 = vadd.f32 1.0, %v1799_v20  ;;  %v1789_v28 = vadd.f32 1.1283791, %v1788_v59 }
 0xf4f   :  { %2222 = vrcp.f32 %v1800_v11  ;;  %v1812_v27 = vand.u32 2147483648, %v1800_v11  ;;  %v1810_v9 = vand.u32 2147483647, %v1800_v11  ;;  %vm1806_vm1 = vweird.f32 %v1800_v11 }
 0xf50   :  { %v1790_v29 = vmul.f32 %v1789_v28, %v1737_v41 }
 0xf51   :  { %v1813_v48 = vor.u32 1.1754944e-38, %v1812_v27  ;;  %vm1811_vm3 = vcmp.eq.f32.partialorder %v1810_v9, 8.507059e+37 }
 0xf55   :  { %v2223_v22 = vpop.eup %2222 }
 0xf56   :  { %v1802_v23 = vmul.f32 %v2223_v22, %v1800_v11  ;;  %vm1807_vm15 = vweird.f32 %v2223_v22 }
 0xf57   :  { %vm1808_vm2 = vmor %vm1806_vm1, %vm1807_vm15 }
 0xf58   :  { %v1803_v25 = vsub.f32 1.0, %v1802_v23 }
 0xf5a   :  { %v1804_v54 = vmul.f32 %v2223_v22, %v1803_v25 }
 0xf5c   :  { %v1805_v47 = vadd.f32 %v2223_v22, %v1804_v54 }
 0xf5e   :  { %v1809_v53 = vsel %vm1808_vm2, %v2223_v22, %v1805_v47 }
 0xf5f   :  { %v1814_v30 = vsel %vm1811_vm3, %v1813_v48, %v1809_v53 }
 0xf60   :  { %v1815_v32 = vmul.f32 %v1814_v30, %v1790_v29 }
 0xf62   :  { %v2054_v33 = vclamps-f32 %v1815_v32, 1.0 }
 0xf64   :  { %v1819_v36 = vadd.f32 1.0, %v2054_v33 }
 0xf66   :  { %v1821_v37 = vmul.f32 %v1819_v36, %v1735_v34 }
 0xf68   :  { %1860 = vmatmul.f32.gmra.mxu0 %v1821_v37 }
 0xfc9   :  { %v1858_v39 = vpop.f32.mrf.mxu0 }
 0xfca   :  { %v1859_v40 = vadd.f32 %v2130_v38, %v1858_v39 }
 0xfcc   :  { %v1864_v42 = vadd.f32 %v1859_v40, %v2876_v63 }
 0xfce   :  { %v1868_v41 = vsel %vm73_vm0, %v1864_v42, 0.0 }
 0xfcf   :  { %1869 = vadd.xlane.f32.xlu0 %v1868_v41 }
 0xfe5   :  { %v1861_v43 = vpop.f32.mrf.mxu0 }
 0xfe6   :  { %v1862_v18 = vadd.f32 %v2130_v38, %v1861_v43 }
 0xfe8   :  { %v1865_v5 = vadd.f32 %v1862_v18, %v2881_v19  ;;  %v1925_v19 = vld [vmem:[%s3033_s16 + $0x18] sm:$0xff] }
 0xfe9   :  { %1948 = vmatpush.msra.mxu1 %v1925_v19 }
 0xfea   :  { %v1871_v26 = vsel %vm73_vm0, %v1865_v5, 0.0 }
 0xfeb   :  { %1872 = vadd.xlane.f32.xlu1 %v1871_v26  ;;  %1949 = vmatpush.msra.mxu1 %v1924_v56 }
 0xfed   :  { %1950 = vmatpush.msra.mxu1 %v1923_v57 }
 0xfef   :  { %1951 = vmatpush.msra.mxu1 %v1922_v55 }
0x1042   :  { %v1870_v62 = vpop.xlane.xlu0 %1869 }
0x1043   :  { %v1874_v2 = vmul.f32 %v1870_v62, %v2378_v13 }
0x1045   :  { %v1876_v4 = vsub.f32 %v1864_v42, %v1874_v2 }
0x1047   :  { %v1878_v45 = vmul.f32 %v1876_v4, %v1876_v4 }
0x1049   :  { %v1880_v3 = vsel %vm73_vm0, %v1878_v45, 0.0 }
0x104a   :  { %1881 = vadd.xlane.f32.xlu2 %v1880_v3 }
0x105e   :  { %v1873_v24 = vpop.xlane.xlu1 %1872 }
0x105f   :  { %v1875_v63 = vmul.f32 %v1873_v24, %v2378_v13 }
0x1061   :  { %v1877_v44 = vsub.f32 %v1865_v5, %v1875_v63 }
0x1063   :  { %v1879_v49 = vmul.f32 %v1877_v44, %v1877_v44 }
0x1065   :  { %v1883_v52 = vsel %vm73_vm0, %v1879_v49, 0.0 }
0x1066   :  { %1884 = vadd.xlane.f32.xlu0 %v1883_v52 }
0x10bd   :  { %v1882_v1 = vpop.xlane.xlu2 %1881 }
0x10be   :  { %v1886_v6 = vmul.f32 %v1882_v1, %v2378_v13 }
0x10c0   :  { %v1888_v7 = vadd.f32 1e-05, %v1886_v6 }
0x10c2   :  { %2224 = vrsqrt.f32 %v1888_v7  ;;  %vm1896_vm8 = vweird.f32 %v1888_v7 }
0x10c8   :  { %v2225_v8 = vpop.eup %2224 }
0x10c9   :  { %v1891_v58 = vmul.f32 %v2225_v8, %v1888_v7  ;;  %vm1897_vm4 = vweird.f32 %v2225_v8 }
0x10ca   :  { %vm1898_vm10 = vmor %vm1896_vm8, %vm1897_vm4 }
0x10cb   :  { %v1892_v61 = vmul.f32 %v2225_v8, %v1891_v58 }
0x10cd   :  { %v1893_v50 = vmul.f32 0.5, %v1892_v61 }
0x10cf   :  { %v1894_v51 = vsub.f32 1.5, %v1893_v50 }
0x10d1   :  { %v1895_v31 = vmul.f32 %v2225_v8, %v1894_v51 }
0x10d3   :  { %v1899_v12 = vsel %vm1898_vm10, %v2225_v8, %v1895_v31 }
0x10d4   :  { %v1910_v46 = vmul.f32 %v1899_v12, %v1876_v4 }
0x10d6   :  { %v1915_v14 = vmul.f32 %v2131_v10, %v1910_v46 }
0x10d8   :  { %v1920_v60 = vadd.f32 %v2132_v35, %v1915_v14 }
0x10d9   :  { %v1885_v15 = vpop.xlane.xlu0 %1884 }
0x10da   :  { %2071 = vmatmul.msk.f32.vlgmr.msra.gmra.mxu1 %vm73_vm0, %v1920_v60  ;;  %v1887_v16 = vmul.f32 %v1885_v15, %v2378_v13  ;;  %v2133_v13 = vld [vmem:[%s3034_s17] ss:$0 sm:$0xff] }
0x10dc   :  { %v1889_v17 = vadd.f32 1e-05, %v1887_v16 }
0x10de   :  { %2226 = vrsqrt.f32 %v1889_v17  ;;  %vm1906_vm5 = vweird.f32 %v1889_v17 }
0x10e4   :  { %v2227_v20 = vpop.eup %2226 }
0x10e5   :  { %v1901_v11 = vmul.f32 %v2227_v20, %v1889_v17  ;;  %vm1907_vm11 = vweird.f32 %v2227_v20 }
0x10e6   :  { %vm1908_vm6 = vmor %vm1906_vm5, %vm1907_vm11 }
0x10e7   :  { %v1902_v0 = vmul.f32 %v2227_v20, %v1901_v11 }
0x10e9   :  { %v1903_v21 = vmul.f32 0.5, %v1902_v0 }
0x10eb   :  { %v1904_v22 = vsub.f32 1.5, %v1903_v21 }
0x10ed   :  { %v1905_v59 = vmul.f32 %v2227_v20, %v1904_v22 }
0x10ef   :  { %v1909_v23 = vsel %vm1908_vm6, %v2227_v20, %v1905_v59 }
0x10f0   :  { %v1911_v25 = vmul.f32 %v1909_v23, %v1877_v44 }
0x10f2   :  { %v1916_v27 = vmul.f32 %v2131_v10, %v1911_v25 }
0x10f4   :  { %v1921_v28 = vadd.f32 %v2132_v35, %v1916_v27 }
0x10f6   :  { %2072 = vmatmul.msk.f32.gmra.mxu1 %vm73_vm0, %v1921_v28 }
0x1157   :  { %v1953_v54 = vpop.f32.mrf.mxu1 }
0x1158   :  { %v1954_v9 = vadd.f32 %v2133_v13, %v1953_v54 }
0x115a   :  { %1959 = vst [vmem:[#allocation2] sm:$0xff] %v1954_v9 }
0x1173   :  { %v1956_v47 = vpop.f32.mrf.mxu1 }
0x1174   :  { %v1957_v48 = vadd.f32 %v2133_v13, %v1956_v47 }
0x1176   :  { %1960 = vst [vmem:[#allocation2 + $0x8] sm:$0xff] %v1957_v48 }
0x1177   :  { %1973 = dma.vmem_to_hbm [thread:$0]  %s1966_s8, 256, %s1968_s0, [#allocation3], %s2265_s19, %s2265_s19, %s3053_s5  }
0x1178   :  { %2252 = dma.done.wait [#allocation3], 256  }
0x1179   :  { %2253 = vsyncadd [#allocation3], 4294967040 }
0x117a   :  { %1978 = vsyncpa [#allocation3], 1 }

</bundles_post_ra>
